<compile_context>
chip_gen: v5e
topology: v5e:2x2
jax: 0.10.0
libtpu: 0.0.40
codegen_flags: <defaults>
</compile_context>

<pallas_src>
import functools

import jax
import jax.numpy as jnp
from jax.experimental import pallas as pl
from jax.experimental.pallas import tpu as pltpu


def _seq2seq_kernel(x_ref,       # (x_len, Bt, D)  time-major input
                    wih_e_ref,   # (D, H)          encoder W_ih^T
                    whh_e_ref,   # (H, H)          encoder W_hh^T
                    b_e_ref,     # (1, H)          encoder b_ih + b_hh (f32)
                    whh_d_ref,   # (H, H)          decoder W_hh^T
                    b_d_ref,     # (1, H)          decoder b_ih + b_hh (f32)
                    wpred_ref,   # (H, D)          pred W^T
                    bpred_ref,   # (1, D)          pred bias (f32)
                    y_ref):      # (y_len, Bt, D)  time-major output (f32)
    x_len, Bt, D = x_ref.shape
    H = whh_e_ref.shape[1]
    y_len = y_ref.shape[0]
    mx = whh_e_ref.dtype            # MXU operand dtype (bf16 or f32)

    wih_e = wih_e_ref[...]
    whh_e = whh_e_ref[...]

    # Independent batch sub-chains to interleave on the serial recurrence.
    if Bt % 32 == 0:
        n_sub = 4
    elif Bt % 16 == 0:
        n_sub = 2
    else:
        n_sub = 1
    Bs = Bt // n_sub

    def sub(v, s):                   # sublane-aligned leading-axis slice (view)
        return v[s * Bs:(s + 1) * Bs]

    # ---- Encoder input projection, hoisted off the serial chain -----------
    #   P[t, b] = x[t, b] @ W_ih^T + (b_ih + b_hh)
    if Bt % 8 == 0:
        # Collapse (x_len, Bt) -> one big MXU matmul; reshape is a free view.
        p_flat = jnp.dot(x_ref[...].reshape(x_len * Bt, D), wih_e,
                         preferred_element_type=jnp.float32) + b_e_ref[...]
        p_all = p_flat.reshape(x_len, Bt, H)
        p = [p_all[t] for t in range(x_len)]          # leading-axis views
    else:
        # Tiny / unaligned batch tile: independent per-step projections,
        # still off the serial chain.
        b_e = jnp.broadcast_to(b_e_ref[...], (Bt, H))  # hoisted broadcast
        p = [jnp.dot(x_ref[t], wih_e, preferred_element_type=jnp.float32) + b_e
             for t in range(x_len)]

    # ---- Encoder recurrence: n_sub interleaved chains, 1 matmul/step each --
    # h_0 = 0 (PyTorch default) => first step is just tanh(P_0).
    hs = [jnp.tanh(sub(p[0], s)) for s in range(n_sub)]
    # TODO(synk): for very large x_len switch this unrolled loop to
    # lax.fori_loop(..., unroll=4) over time-major p_all to bound live ranges.
    for t in range(1, x_len):
        zs = [jnp.dot(hs[s].astype(mx), whh_e,
                      preferred_element_type=jnp.float32)
              for s in range(n_sub)]                    # independent matmuls
        hs = [jnp.tanh(sub(p[t], s) + zs[s]) for s in range(n_sub)]

    # ---- Decoder recurrence (zero inputs): ONLY h @ W_hh on the chain ------
    whh_d = whh_d_ref[...]
    b_d = jnp.broadcast_to(b_d_ref[...], (Bs, H))       # hoisted broadcast
    dec_h = []
    for _ in range(y_len):
        zs = [jnp.dot(hs[s].astype(mx), whh_d,
                      preferred_element_type=jnp.float32)
              for s in range(n_sub)]
        hs = [jnp.tanh(zs[s] + b_d) for s in range(n_sub)]
        dec_h.append(hs)

    # ---- Prediction head: ONE batched matmul off the chain, single store ---
    h_stack = jnp.concatenate([h for step in dec_h for h in step], axis=0)
    y_flat = jnp.dot(h_stack.astype(mx), wpred_ref[...],
                     preferred_element_type=jnp.float32) + bpred_ref[...]
    y_ref[...] = y_flat.reshape(y_len, Bt, D)


# ---------------------------------------------------------------------------
# Tile selection / VMEM budgeting
# ---------------------------------------------------------------------------

_VMEM_BUDGET = 28 * 1024 * 1024        # conservative: fits v5e/v6e/v7x scoped


def _vmem_footprint(bt, x_len, y_len, dim, h_dim, in_bytes, w_bytes):
    x_blk = 2 * bt * x_len * dim * in_bytes        # double-buffered input block
    out_blk = 2 * y_len * bt * dim * 4             # double-buffered output
    p_all = bt * x_len * h_dim * 4                 # hoisted projection (f32)
    h_stack = (y_len + 1) * bt * h_dim * 4         # decoder hidden stack (f32)
    weights = (dim * h_dim + 2 * h_dim * h_dim + h_dim * dim) * w_bytes \
        + (3 * h_dim + dim) * 4                    # single-buffered weights
    live = 8 * bt * h_dim * 4                      # h/z temporaries headroom
    return x_blk + out_blk + p_all + h_stack + weights + live


def _pick_batch_tile(B, x_len, y_len, dim, h_dim, in_bytes, w_bytes):
    if B <= 8:
        return B
    bt = 8
    for t in (512, 256, 128, 64, 32, 16, 8):
        if t <= B and _vmem_footprint(t, x_len, y_len, dim, h_dim,
                                      in_bytes, w_bytes) <= _VMEM_BUDGET:
            bt = t
            break
    # Keep >= 2 grid iterations so v7x's two TensorCores both get work
    # (near-free on single-TC v5e/v6e: ~0.35us per extra grid step).
    while bt >= 16 and pl.cdiv(B, bt) < 2:
        bt //= 2
    return bt


# ---------------------------------------------------------------------------
# Wrapper
# ---------------------------------------------------------------------------

def rnn_seq2seq_forward(x, params, *, x_len, y_len, dim, h_dim,
                        batch_tile=None, compute_dtype=jnp.bfloat16,
                        single_buffer_weights=True):
    """x: (B, x_len*dim) or (B, x_len, dim). Returns (B, y_len*dim) float32."""
    B = x.shape[0]
    cd = jnp.dtype(compute_dtype)
    in_bytes = cd.itemsize

    # Time-major input: per-step slices inside the kernel are free views.
    x_tm = jnp.transpose(x.reshape(B, x_len, dim), (1, 0, 2)).astype(cd)

    w_ih_e = params["w_ih_enc"].T.astype(cd)                            # (D, H)
    w_hh_e = params["w_hh_enc"].T.astype(cd)                            # (H, H)
    b_e = (params["b_ih_enc"] + params["b_hh_enc"]
           ).reshape(1, h_dim).astype(jnp.float32)
    w_hh_d = params["w_hh_dec"].T.astype(cd)                            # (H, H)
    b_d = (params["b_ih_dec"] + params["b_hh_dec"]
           ).reshape(1, h_dim).astype(jnp.float32)
    w_pred = params["w_pred"].T.astype(cd)                              # (H, D)
    b_pred = params["b_pred"].reshape(1, dim).astype(jnp.float32)

    bt = batch_tile or _pick_batch_tile(B, x_len, y_len, dim, h_dim,
                                        in_bytes, in_bytes)
    grid = (pl.cdiv(B, bt),)

    footprint = _vmem_footprint(bt, x_len, y_len, dim, h_dim, in_bytes, in_bytes)
    vmem_limit = int(min(32 * 1024 * 1024,
                         max(8 * 1024 * 1024, int(1.25 * footprint))))

    # Weights / biases stay resident in VMEM across the batch grid; their block
    # index never changes, so single-buffer them to save VMEM for the batch tile.
    def wspec(shape):
        nd = len(shape)
        if single_buffer_weights:
            return pl.BlockSpec(shape, lambda i, _n=nd: (0,) * _n,
                                pipeline_mode=pl.Buffered(1))
        return pl.BlockSpec(shape, lambda i, _n=nd: (0,) * _n)

    flops = 2 * B * (x_len * dim * h_dim                 # input projection
                     + (x_len - 1) * h_dim * h_dim       # encoder recurrence
                     + y_len * h_dim * h_dim             # decoder recurrence
                     + y_len * h_dim * dim)              # batched pred head
    bytes_accessed = int(x_tm.size * in_bytes + B * y_len * dim * 4
                         + (w_ih_e.size + w_hh_e.size + w_hh_d.size
                            + w_pred.size) * in_bytes
                         + (b_e.size + b_d.size + b_pred.size) * 4)

    y_tm = pl.pallas_call(
        _seq2seq_kernel,
        out_shape=jax.ShapeDtypeStruct((y_len, B, dim), jnp.float32),
        grid=grid,
        in_specs=[
            pl.BlockSpec((x_len, bt, dim), lambda i: (0, i, 0)),
            wspec(w_ih_e.shape),
            wspec(w_hh_e.shape),
            wspec(b_e.shape),
            wspec(w_hh_d.shape),
            wspec(b_d.shape),
            wspec(w_pred.shape),
            wspec(b_pred.shape),
        ],
        out_specs=pl.BlockSpec((y_len, bt, dim), lambda i: (0, i, 0)),
        compiler_params=pltpu.CompilerParams(
            dimension_semantics=("parallel",),
            vmem_limit_bytes=vmem_limit),
        cost_estimate=pl.CostEstimate(
            flops=flops,
            transcendentals=B * (x_len + y_len) * h_dim,
            bytes_accessed=bytes_accessed),
    )(x_tm, w_ih_e, w_hh_e, b_e, w_hh_d, b_d, w_pred, b_pred)

    # Layout plumbing back to the module's (B, y_len*dim) output.
    return jnp.transpose(y_tm, (1, 0, 2)).reshape(B, y_len * dim)


# ---------------------------------------------------------------------------
# Params / reference
# ---------------------------------------------------------------------------

def init_params(key, dim, h_dim):
    """Deterministic init matching PyTorch nn.RNN / nn.Linear shapes."""
    k_rnn = 1.0 / jnp.sqrt(h_dim)
    k_lin = 1.0 / jnp.sqrt(h_dim)
    keys = jax.random.split(key, 10)
    u = lambda k, shape, s: jax.random.uniform(k, shape, jnp.float32, -s, s)
    return {
        # encoder nn.RNN(dim, h_dim)
        "w_ih_enc": u(keys[0], (h_dim, dim), k_rnn),
        "w_hh_enc": u(keys[1], (h_dim, h_dim), k_rnn),
        "b_ih_enc": u(keys[2], (h_dim,), k_rnn),
        "b_hh_enc": u(keys[3], (h_dim,), k_rnn),
        # decoder nn.RNN(dim, h_dim)  (w_ih_dec unused: decoder input is zeros)
        "w_ih_dec": u(keys[4], (h_dim, dim), k_rnn),
        "w_hh_dec": u(keys[5], (h_dim, h_dim), k_rnn),
        "b_ih_dec": u(keys[6], (h_dim,), k_rnn),
        "b_hh_dec": u(keys[7], (h_dim,), k_rnn),
        # pred nn.Linear(h_dim, dim)
        "w_pred": u(keys[8], (dim, h_dim), k_lin),
        "b_pred": u(keys[9], (dim,), k_lin),
    }


def reference_forward(x, params, *, x_len, y_len, dim, h_dim):
    """Pure-JAX reference matching PyTorch RNN semantics (sanity check)."""
    B = x.shape[0]
    x3 = x.reshape(B, x_len, dim)
    h = jnp.zeros((B, h_dim), jnp.float32)
    for t in range(x_len):
        h = jnp.tanh(x3[:, t, :] @ params["w_ih_enc"].T + params["b_ih_enc"]
                     + h @ params["w_hh_enc"].T + params["b_hh_enc"])
    ys = []
    for t in range(y_len):
        h = jnp.tanh(params["b_ih_dec"] + h @ params["w_hh_dec"].T
                     + params["b_hh_dec"])
        ys.append(h @ params["w_pred"].T + params["b_pred"])
    y = jnp.stack(ys, axis=1)
    return y.reshape(B, -1)


if __name__ == "__main__":
    B, dim, x_len, y_len, h_dim = 2, 4, 8, 8, 32

    key = jax.random.PRNGKey(0)
    pkey, xkey = jax.random.split(key)
    params = init_params(pkey, dim, h_dim)
    x = jax.random.normal(xkey, (B, x_len * dim), jnp.float32)

    fwd = functools.partial(rnn_seq2seq_forward,
                            x_len=x_len, y_len=y_len, dim=dim, h_dim=h_dim)
    y_ref = reference_forward(x, params, x_len=x_len, y_len=y_len,
                              dim=dim, h_dim=h_dim)

    # f32 run: strict check against the PyTorch-semantics reference.
    single_buf = True
    try:
        y_f32 = jax.block_until_ready(jax.jit(
            lambda xx: fwd(xx, params, compute_dtype=jnp.float32))(x))
    except Exception:
        # Fallback if this jax build rejects pipeline_mode=pl.Buffered(1).
        single_buf = False
        y_f32 = jax.block_until_ready(jax.jit(
            lambda xx: fwd(xx, params, compute_dtype=jnp.float32,
                           single_buffer_weights=False))(x))
    assert y_f32.shape == (B, y_len * dim)
    assert jnp.allclose(y_f32, y_ref, atol=1e-5, rtol=1e-5), \
        "f32 mismatch vs reference"

    # bf16 run (default perf path): relaxed tolerance through the tanh chain.
    y_bf16 = jax.block_until_ready(jax.jit(
        lambda xx: fwd(xx, params, single_buffer_weights=single_buf))(x))
    assert y_bf16.shape == (B, y_len * dim)
    assert jnp.allclose(y_bf16, y_ref, atol=5e-2, rtol=5e-2), \
        "bf16 mismatch vs reference"

    print("KERNEL_OK")
</pallas_src>

<mosaic_0001>
module attributes {stable_mosaic.version = 11 : i64} {
  func.func @_seq2seq_kernel(%arg0: i32, %arg1: memref<8x2x4xf32, #tpu.memory_space<vmem>>, %arg2: memref<4x32xf32, #tpu.memory_space<vmem>>, %arg3: memref<32x32xf32, #tpu.memory_space<vmem>>, %arg4: memref<1x32xf32, #tpu.memory_space<vmem>>, %arg5: memref<32x32xf32, #tpu.memory_space<vmem>>, %arg6: memref<1x32xf32, #tpu.memory_space<vmem>>, %arg7: memref<32x4xf32, #tpu.memory_space<vmem>>, %arg8: memref<1x4xf32, #tpu.memory_space<vmem>>, %arg9: memref<8x2x4xf32, #tpu.memory_space<vmem>>) attributes {dimension_semantics = [#tpu.dimension_semantics<parallel>], iteration_bounds = array<i64: 1>, scalar_prefetch = 0 : i64, scratch_operands = 0 : i64, tpu.core_type = #tpu.core_type<tc>, window_params = [{transform_indices = @transform_0, window_bounds = array<i64: 8, 2, 4>}, {pipeline_mode = #tpu.pipeline_mode<synchronous>, transform_indices = @transform_1, window_bounds = array<i64: 4, 32>}, {pipeline_mode = #tpu.pipeline_mode<synchronous>, transform_indices = @transform_2, window_bounds = array<i64: 32, 32>}, {pipeline_mode = #tpu.pipeline_mode<synchronous>, transform_indices = @transform_3, window_bounds = array<i64: 1, 32>}, {pipeline_mode = #tpu.pipeline_mode<synchronous>, transform_indices = @transform_4, window_bounds = array<i64: 32, 32>}, {pipeline_mode = #tpu.pipeline_mode<synchronous>, transform_indices = @transform_5, window_bounds = array<i64: 1, 32>}, {pipeline_mode = #tpu.pipeline_mode<synchronous>, transform_indices = @transform_6, window_bounds = array<i64: 32, 4>}, {pipeline_mode = #tpu.pipeline_mode<synchronous>, transform_indices = @transform_7, window_bounds = array<i64: 1, 4>}, {transform_indices = @transform_8, window_bounds = array<i64: 8, 2, 4>}]} {
    %c0 = arith.constant 0 : index
    %c0_0 = arith.constant 0 : index
    %0 = vector.load %arg2[%c0, %c0_0] : memref<4x32xf32, #tpu.memory_space<vmem>>, vector<4x32xf32>
    %c0_1 = arith.constant 0 : index
    %c0_2 = arith.constant 0 : index
    %1 = vector.load %arg3[%c0_1, %c0_2] : memref<32x32xf32, #tpu.memory_space<vmem>>, vector<32x32xf32>
    %c0_3 = arith.constant 0 : index
    %c0_4 = arith.constant 0 : index
    %2 = vector.load %arg4[%c0_3, %c0_4] : memref<1x32xf32, #tpu.memory_space<vmem>>, vector<1x32xf32>
    %3 = vector.shape_cast %2 : vector<1x32xf32> to vector<1x32xf32>
    %4 = vector.broadcast %3 : vector<1x32xf32> to vector<2x32xf32>
    %c0_5 = arith.constant 0 : index
    %c0_6 = arith.constant 0 : index
    %c0_7 = arith.constant 0 : index
    %5 = vector.load %arg1[%c0_5, %c0_6, %c0_7] : memref<8x2x4xf32, #tpu.memory_space<vmem>>, vector<1x2x4xf32>
    %6 = vector.shape_cast %5 : vector<1x2x4xf32> to vector<2x4xf32>
    %cst = arith.constant dense<0.000000e+00> : vector<2x32xf32>
    %7 = tpu.matmul %6, %0, %cst {dimension_numbers = #tpu.dot_dimension_numbers<[1], [0], [0], [1], [0, 0, 1, 1], [], []>} : vector<2x4xf32>, vector<4x32xf32>, vector<2x32xf32> -> vector<2x32xf32>
    %8 = arith.addf %7, %4 : vector<2x32xf32>
    %c1 = arith.constant 1 : index
    %c0_8 = arith.constant 0 : index
    %c0_9 = arith.constant 0 : index
    %9 = vector.load %arg1[%c1, %c0_8, %c0_9] : memref<8x2x4xf32, #tpu.memory_space<vmem>>, vector<1x2x4xf32>
    %10 = vector.shape_cast %9 : vector<1x2x4xf32> to vector<2x4xf32>
    %cst_10 = arith.constant dense<0.000000e+00> : vector<2x32xf32>
    %11 = tpu.matmul %10, %0, %cst_10 {dimension_numbers = #tpu.dot_dimension_numbers<[1], [0], [0], [1], [0, 0, 1, 1], [], []>} : vector<2x4xf32>, vector<4x32xf32>, vector<2x32xf32> -> vector<2x32xf32>
    %12 = arith.addf %11, %4 : vector<2x32xf32>
    %c2 = arith.constant 2 : index
    %c0_11 = arith.constant 0 : index
    %c0_12 = arith.constant 0 : index
    %13 = vector.load %arg1[%c2, %c0_11, %c0_12] : memref<8x2x4xf32, #tpu.memory_space<vmem>>, vector<1x2x4xf32>
    %14 = vector.shape_cast %13 : vector<1x2x4xf32> to vector<2x4xf32>
    %cst_13 = arith.constant dense<0.000000e+00> : vector<2x32xf32>
    %15 = tpu.matmul %14, %0, %cst_13 {dimension_numbers = #tpu.dot_dimension_numbers<[1], [0], [0], [1], [0, 0, 1, 1], [], []>} : vector<2x4xf32>, vector<4x32xf32>, vector<2x32xf32> -> vector<2x32xf32>
    %16 = arith.addf %15, %4 : vector<2x32xf32>
    %c3 = arith.constant 3 : index
    %c0_14 = arith.constant 0 : index
    %c0_15 = arith.constant 0 : index
    %17 = vector.load %arg1[%c3, %c0_14, %c0_15] : memref<8x2x4xf32, #tpu.memory_space<vmem>>, vector<1x2x4xf32>
    %18 = vector.shape_cast %17 : vector<1x2x4xf32> to vector<2x4xf32>
    %cst_16 = arith.constant dense<0.000000e+00> : vector<2x32xf32>
    %19 = tpu.matmul %18, %0, %cst_16 {dimension_numbers = #tpu.dot_dimension_numbers<[1], [0], [0], [1], [0, 0, 1, 1], [], []>} : vector<2x4xf32>, vector<4x32xf32>, vector<2x32xf32> -> vector<2x32xf32>
    %20 = arith.addf %19, %4 : vector<2x32xf32>
    %c4 = arith.constant 4 : index
    %c0_17 = arith.constant 0 : index
    %c0_18 = arith.constant 0 : index
    %21 = vector.load %arg1[%c4, %c0_17, %c0_18] : memref<8x2x4xf32, #tpu.memory_space<vmem>>, vector<1x2x4xf32>
    %22 = vector.shape_cast %21 : vector<1x2x4xf32> to vector<2x4xf32>
    %cst_19 = arith.constant dense<0.000000e+00> : vector<2x32xf32>
    %23 = tpu.matmul %22, %0, %cst_19 {dimension_numbers = #tpu.dot_dimension_numbers<[1], [0], [0], [1], [0, 0, 1, 1], [], []>} : vector<2x4xf32>, vector<4x32xf32>, vector<2x32xf32> -> vector<2x32xf32>
    %24 = arith.addf %23, %4 : vector<2x32xf32>
    %c5 = arith.constant 5 : index
    %c0_20 = arith.constant 0 : index
    %c0_21 = arith.constant 0 : index
    %25 = vector.load %arg1[%c5, %c0_20, %c0_21] : memref<8x2x4xf32, #tpu.memory_space<vmem>>, vector<1x2x4xf32>
    %26 = vector.shape_cast %25 : vector<1x2x4xf32> to vector<2x4xf32>
    %cst_22 = arith.constant dense<0.000000e+00> : vector<2x32xf32>
    %27 = tpu.matmul %26, %0, %cst_22 {dimension_numbers = #tpu.dot_dimension_numbers<[1], [0], [0], [1], [0, 0, 1, 1], [], []>} : vector<2x4xf32>, vector<4x32xf32>, vector<2x32xf32> -> vector<2x32xf32>
    %28 = arith.addf %27, %4 : vector<2x32xf32>
    %c6 = arith.constant 6 : index
    %c0_23 = arith.constant 0 : index
    %c0_24 = arith.constant 0 : index
    %29 = vector.load %arg1[%c6, %c0_23, %c0_24] : memref<8x2x4xf32, #tpu.memory_space<vmem>>, vector<1x2x4xf32>
    %30 = vector.shape_cast %29 : vector<1x2x4xf32> to vector<2x4xf32>
    %cst_25 = arith.constant dense<0.000000e+00> : vector<2x32xf32>
    %31 = tpu.matmul %30, %0, %cst_25 {dimension_numbers = #tpu.dot_dimension_numbers<[1], [0], [0], [1], [0, 0, 1, 1], [], []>} : vector<2x4xf32>, vector<4x32xf32>, vector<2x32xf32> -> vector<2x32xf32>
    %32 = arith.addf %31, %4 : vector<2x32xf32>
    %c7 = arith.constant 7 : index
    %c0_26 = arith.constant 0 : index
    %c0_27 = arith.constant 0 : index
    %33 = vector.load %arg1[%c7, %c0_26, %c0_27] : memref<8x2x4xf32, #tpu.memory_space<vmem>>, vector<1x2x4xf32>
    %34 = vector.shape_cast %33 : vector<1x2x4xf32> to vector<2x4xf32>
    %cst_28 = arith.constant dense<0.000000e+00> : vector<2x32xf32>
    %35 = tpu.matmul %34, %0, %cst_28 {dimension_numbers = #tpu.dot_dimension_numbers<[1], [0], [0], [1], [0, 0, 1, 1], [], []>} : vector<2x4xf32>, vector<4x32xf32>, vector<2x32xf32> -> vector<2x32xf32>
    %36 = arith.addf %35, %4 : vector<2x32xf32>
    %37 = math.tanh %8 : vector<2x32xf32>
    %cst_29 = arith.constant dense<0.000000e+00> : vector<2x32xf32>
    %38 = tpu.matmul %37, %1, %cst_29 {dimension_numbers = #tpu.dot_dimension_numbers<[1], [0], [0], [1], [0, 0, 1, 1], [], []>} : vector<2x32xf32>, vector<32x32xf32>, vector<2x32xf32> -> vector<2x32xf32>
    %39 = arith.addf %12, %38 : vector<2x32xf32>
    %40 = math.tanh %39 : vector<2x32xf32>
    %cst_30 = arith.constant dense<0.000000e+00> : vector<2x32xf32>
    %41 = tpu.matmul %40, %1, %cst_30 {dimension_numbers = #tpu.dot_dimension_numbers<[1], [0], [0], [1], [0, 0, 1, 1], [], []>} : vector<2x32xf32>, vector<32x32xf32>, vector<2x32xf32> -> vector<2x32xf32>
    %42 = arith.addf %16, %41 : vector<2x32xf32>
    %43 = math.tanh %42 : vector<2x32xf32>
    %cst_31 = arith.constant dense<0.000000e+00> : vector<2x32xf32>
    %44 = tpu.matmul %43, %1, %cst_31 {dimension_numbers = #tpu.dot_dimension_numbers<[1], [0], [0], [1], [0, 0, 1, 1], [], []>} : vector<2x32xf32>, vector<32x32xf32>, vector<2x32xf32> -> vector<2x32xf32>
    %45 = arith.addf %20, %44 : vector<2x32xf32>
    %46 = math.tanh %45 : vector<2x32xf32>
    %cst_32 = arith.constant dense<0.000000e+00> : vector<2x32xf32>
    %47 = tpu.matmul %46, %1, %cst_32 {dimension_numbers = #tpu.dot_dimension_numbers<[1], [0], [0], [1], [0, 0, 1, 1], [], []>} : vector<2x32xf32>, vector<32x32xf32>, vector<2x32xf32> -> vector<2x32xf32>
    %48 = arith.addf %24, %47 : vector<2x32xf32>
    %49 = math.tanh %48 : vector<2x32xf32>
    %cst_33 = arith.constant dense<0.000000e+00> : vector<2x32xf32>
    %50 = tpu.matmul %49, %1, %cst_33 {dimension_numbers = #tpu.dot_dimension_numbers<[1], [0], [0], [1], [0, 0, 1, 1], [], []>} : vector<2x32xf32>, vector<32x32xf32>, vector<2x32xf32> -> vector<2x32xf32>
    %51 = arith.addf %28, %50 : vector<2x32xf32>
    %52 = math.tanh %51 : vector<2x32xf32>
    %cst_34 = arith.constant dense<0.000000e+00> : vector<2x32xf32>
    %53 = tpu.matmul %52, %1, %cst_34 {dimension_numbers = #tpu.dot_dimension_numbers<[1], [0], [0], [1], [0, 0, 1, 1], [], []>} : vector<2x32xf32>, vector<32x32xf32>, vector<2x32xf32> -> vector<2x32xf32>
    %54 = arith.addf %32, %53 : vector<2x32xf32>
    %55 = math.tanh %54 : vector<2x32xf32>
    %cst_35 = arith.constant dense<0.000000e+00> : vector<2x32xf32>
    %56 = tpu.matmul %55, %1, %cst_35 {dimension_numbers = #tpu.dot_dimension_numbers<[1], [0], [0], [1], [0, 0, 1, 1], [], []>} : vector<2x32xf32>, vector<32x32xf32>, vector<2x32xf32> -> vector<2x32xf32>
    %57 = arith.addf %36, %56 : vector<2x32xf32>
    %58 = math.tanh %57 : vector<2x32xf32>
    %c0_36 = arith.constant 0 : index
    %c0_37 = arith.constant 0 : index
    %59 = vector.load %arg5[%c0_36, %c0_37] : memref<32x32xf32, #tpu.memory_space<vmem>>, vector<32x32xf32>
    %c0_38 = arith.constant 0 : index
    %c0_39 = arith.constant 0 : index
    %60 = vector.load %arg6[%c0_38, %c0_39] : memref<1x32xf32, #tpu.memory_space<vmem>>, vector<1x32xf32>
    %61 = vector.shape_cast %60 : vector<1x32xf32> to vector<1x32xf32>
    %62 = vector.broadcast %61 : vector<1x32xf32> to vector<2x32xf32>
    %cst_40 = arith.constant dense<0.000000e+00> : vector<2x32xf32>
    %63 = tpu.matmul %58, %59, %cst_40 {dimension_numbers = #tpu.dot_dimension_numbers<[1], [0], [0], [1], [0, 0, 1, 1], [], []>} : vector<2x32xf32>, vector<32x32xf32>, vector<2x32xf32> -> vector<2x32xf32>
    %64 = arith.addf %63, %62 : vector<2x32xf32>
    %65 = math.tanh %64 : vector<2x32xf32>
    %cst_41 = arith.constant dense<0.000000e+00> : vector<2x32xf32>
    %66 = tpu.matmul %65, %59, %cst_41 {dimension_numbers = #tpu.dot_dimension_numbers<[1], [0], [0], [1], [0, 0, 1, 1], [], []>} : vector<2x32xf32>, vector<32x32xf32>, vector<2x32xf32> -> vector<2x32xf32>
    %67 = arith.addf %66, %62 : vector<2x32xf32>
    %68 = math.tanh %67 : vector<2x32xf32>
    %cst_42 = arith.constant dense<0.000000e+00> : vector<2x32xf32>
    %69 = tpu.matmul %68, %59, %cst_42 {dimension_numbers = #tpu.dot_dimension_numbers<[1], [0], [0], [1], [0, 0, 1, 1], [], []>} : vector<2x32xf32>, vector<32x32xf32>, vector<2x32xf32> -> vector<2x32xf32>
    %70 = arith.addf %69, %62 : vector<2x32xf32>
    %71 = math.tanh %70 : vector<2x32xf32>
    %cst_43 = arith.constant dense<0.000000e+00> : vector<2x32xf32>
    %72 = tpu.matmul %71, %59, %cst_43 {dimension_numbers = #tpu.dot_dimension_numbers<[1], [0], [0], [1], [0, 0, 1, 1], [], []>} : vector<2x32xf32>, vector<32x32xf32>, vector<2x32xf32> -> vector<2x32xf32>
    %73 = arith.addf %72, %62 : vector<2x32xf32>
    %74 = math.tanh %73 : vector<2x32xf32>
    %cst_44 = arith.constant dense<0.000000e+00> : vector<2x32xf32>
    %75 = tpu.matmul %74, %59, %cst_44 {dimension_numbers = #tpu.dot_dimension_numbers<[1], [0], [0], [1], [0, 0, 1, 1], [], []>} : vector<2x32xf32>, vector<32x32xf32>, vector<2x32xf32> -> vector<2x32xf32>
    %76 = arith.addf %75, %62 : vector<2x32xf32>
    %77 = math.tanh %76 : vector<2x32xf32>
    %cst_45 = arith.constant dense<0.000000e+00> : vector<2x32xf32>
    %78 = tpu.matmul %77, %59, %cst_45 {dimension_numbers = #tpu.dot_dimension_numbers<[1], [0], [0], [1], [0, 0, 1, 1], [], []>} : vector<2x32xf32>, vector<32x32xf32>, vector<2x32xf32> -> vector<2x32xf32>
    %79 = arith.addf %78, %62 : vector<2x32xf32>
    %80 = math.tanh %79 : vector<2x32xf32>
    %cst_46 = arith.constant dense<0.000000e+00> : vector<2x32xf32>
    %81 = tpu.matmul %80, %59, %cst_46 {dimension_numbers = #tpu.dot_dimension_numbers<[1], [0], [0], [1], [0, 0, 1, 1], [], []>} : vector<2x32xf32>, vector<32x32xf32>, vector<2x32xf32> -> vector<2x32xf32>
    %82 = arith.addf %81, %62 : vector<2x32xf32>
    %83 = math.tanh %82 : vector<2x32xf32>
    %cst_47 = arith.constant dense<0.000000e+00> : vector<2x32xf32>
    %84 = tpu.matmul %83, %59, %cst_47 {dimension_numbers = #tpu.dot_dimension_numbers<[1], [0], [0], [1], [0, 0, 1, 1], [], []>} : vector<2x32xf32>, vector<32x32xf32>, vector<2x32xf32> -> vector<2x32xf32>
    %85 = arith.addf %84, %62 : vector<2x32xf32>
    %86 = math.tanh %85 : vector<2x32xf32>
    %87 = tpu.concatenate %65, %68, %71, %74, %77, %80, %83, %86 in 0 : vector<2x32xf32>, vector<2x32xf32>, vector<2x32xf32>, vector<2x32xf32>, vector<2x32xf32>, vector<2x32xf32>, vector<2x32xf32>, vector<2x32xf32> -> vector<16x32xf32>
    %c0_48 = arith.constant 0 : index
    %c0_49 = arith.constant 0 : index
    %88 = vector.load %arg7[%c0_48, %c0_49] : memref<32x4xf32, #tpu.memory_space<vmem>>, vector<32x4xf32>
    %cst_50 = arith.constant dense<0.000000e+00> : vector<16x4xf32>
    %89 = tpu.matmul %87, %88, %cst_50 {dimension_numbers = #tpu.dot_dimension_numbers<[1], [0], [0], [1], [0, 0, 1, 1], [], []>} : vector<16x32xf32>, vector<32x4xf32>, vector<16x4xf32> -> vector<16x4xf32>
    %c0_51 = arith.constant 0 : index
    %c0_52 = arith.constant 0 : index
    %90 = vector.load %arg8[%c0_51, %c0_52] : memref<1x4xf32, #tpu.memory_space<vmem>>, vector<1x4xf32>
    %91 = vector.broadcast %90 : vector<1x4xf32> to vector<16x4xf32>
    %92 = arith.addf %89, %91 : vector<16x4xf32>
    %93 = vector.shape_cast %92 : vector<16x4xf32> to vector<8x2x4xf32>
    %c0_53 = arith.constant 0 : index
    %c0_54 = arith.constant 0 : index
    %c0_55 = arith.constant 0 : index
    %94 = vector.load %arg9[%c0_53, %c0_54, %c0_55] : memref<8x2x4xf32, #tpu.memory_space<vmem>>, vector<8x2x4xf32>
    tpu.vector_store %arg9[%c0_53, %c0_54, %c0_55], %93 {strides = array<i32>} : memref<8x2x4xf32, #tpu.memory_space<vmem>>, vector<8x2x4xf32>,
    return
  }
  func.func @transform_0(%arg0: i32) -> (i32, i32, i32) {
    %c0_i32 = arith.constant 0 : i32
    %c0_i32_0 = arith.constant 0 : i32
    %c0_i32_1 = arith.constant 0 : i32
    return %c0_i32, %arg0, %c0_i32_0 : i32, i32, i32
  }
  func.func @transform_1(%arg0: i32) -> (i32, i32) {
    %c0_i32 = arith.constant 0 : i32
    %c0_i32_0 = arith.constant 0 : i32
    %c0_i32_1 = arith.constant 0 : i32
    return %c0_i32, %c0_i32_0 : i32, i32
  }
  func.func @transform_2(%arg0: i32) -> (i32, i32) {
    %c0_i32 = arith.constant 0 : i32
    %c0_i32_0 = arith.constant 0 : i32
    %c0_i32_1 = arith.constant 0 : i32
    return %c0_i32, %c0_i32_0 : i32, i32
  }
  func.func @transform_3(%arg0: i32) -> (i32, i32) {
    %c0_i32 = arith.constant 0 : i32
    %c0_i32_0 = arith.constant 0 : i32
    %c0_i32_1 = arith.constant 0 : i32
    return %c0_i32, %c0_i32_0 : i32, i32
  }
  func.func @transform_4(%arg0: i32) -> (i32, i32) {
    %c0_i32 = arith.constant 0 : i32
    %c0_i32_0 = arith.constant 0 : i32
    %c0_i32_1 = arith.constant 0 : i32
    return %c0_i32, %c0_i32_0 : i32, i32
  }
  func.func @transform_5(%arg0: i32) -> (i32, i32) {
    %c0_i32 = arith.constant 0 : i32
    %c0_i32_0 = arith.constant 0 : i32
    %c0_i32_1 = arith.constant 0 : i32
    return %c0_i32, %c0_i32_0 : i32, i32
  }
  func.func @transform_6(%arg0: i32) -> (i32, i32) {
    %c0_i32 = arith.constant 0 : i32
    %c0_i32_0 = arith.constant 0 : i32
    %c0_i32_1 = arith.constant 0 : i32
    return %c0_i32, %c0_i32_0 : i32, i32
  }
  func.func @transform_7(%arg0: i32) -> (i32, i32) {
    %c0_i32 = arith.constant 0 : i32
    %c0_i32_0 = arith.constant 0 : i32
    %c0_i32_1 = arith.constant 0 : i32
    return %c0_i32, %c0_i32_0 : i32, i32
  }
  func.func @transform_8(%arg0: i32) -> (i32, i32, i32) {
    %c0_i32 = arith.constant 0 : i32
    %c0_i32_0 = arith.constant 0 : i32
    %c0_i32_1 = arith.constant 0 : i32
    return %c0_i32, %arg0, %c0_i32_0 : i32, i32, i32
  }
}

module attributes {stable_mosaic.version = 11 : i64} {
  func.func @_seq2seq_kernel(%arg0: i32, %arg1: memref<8x2x4xf32, #tpu.memory_space<vmem>>, %arg2: memref<4x32xf32, #tpu.memory_space<vmem>>, %arg3: memref<32x32xf32, #tpu.memory_space<vmem>>, %arg4: memref<1x32xf32, #tpu.memory_space<vmem>>, %arg5: memref<32x32xf32, #tpu.memory_space<vmem>>, %arg6: memref<1x32xf32, #tpu.memory_space<vmem>>, %arg7: memref<32x4xf32, #tpu.memory_space<vmem>>, %arg8: memref<1x4xf32, #tpu.memory_space<vmem>>, %arg9: memref<8x2x4xf32, #tpu.memory_space<vmem>>) attributes {dimension_semantics = [#tpu.dimension_semantics<parallel>], iteration_bounds = array<i64: 1>, scalar_prefetch = 0 : i64, scratch_operands = 0 : i64, tpu.core_type = #tpu.core_type<tc>, window_params = [{transform_indices = @transform_0, window_bounds = array<i64: 8, 2, 4>}, {pipeline_mode = #tpu.pipeline_mode<synchronous>, transform_indices = @transform_1, window_bounds = array<i64: 4, 32>}, {pipeline_mode = #tpu.pipeline_mode<synchronous>, transform_indices = @transform_2, window_bounds = array<i64: 32, 32>}, {pipeline_mode = #tpu.pipeline_mode<synchronous>, transform_indices = @transform_3, window_bounds = array<i64: 1, 32>}, {pipeline_mode = #tpu.pipeline_mode<synchronous>, transform_indices = @transform_4, window_bounds = array<i64: 32, 32>}, {pipeline_mode = #tpu.pipeline_mode<synchronous>, transform_indices = @transform_5, window_bounds = array<i64: 1, 32>}, {pipeline_mode = #tpu.pipeline_mode<synchronous>, transform_indices = @transform_6, window_bounds = array<i64: 32, 4>}, {pipeline_mode = #tpu.pipeline_mode<synchronous>, transform_indices = @transform_7, window_bounds = array<i64: 1, 4>}, {transform_indices = @transform_8, window_bounds = array<i64: 8, 2, 4>}]} {
    %c0 = arith.constant 0 : index
    %c0_0 = arith.constant 0 : index
    %0 = vector.load %arg2[%c0, %c0_0] : memref<4x32xf32, #tpu.memory_space<vmem>>, vector<4x32xf32>
    %c0_1 = arith.constant 0 : index
    %c0_2 = arith.constant 0 : index
    %1 = vector.load %arg3[%c0_1, %c0_2] : memref<32x32xf32, #tpu.memory_space<vmem>>, vector<32x32xf32>
    %c0_3 = arith.constant 0 : index
    %c0_4 = arith.constant 0 : index
    %2 = vector.load %arg4[%c0_3, %c0_4] : memref<1x32xf32, #tpu.memory_space<vmem>>, vector<1x32xf32>
    %3 = vector.shape_cast %2 : vector<1x32xf32> to vector<1x32xf32>
    %4 = vector.broadcast %3 : vector<1x32xf32> to vector<2x32xf32>
    %c0_5 = arith.constant 0 : index
    %c0_6 = arith.constant 0 : index
    %c0_7 = arith.constant 0 : index
    %5 = vector.load %arg1[%c0_5, %c0_6, %c0_7] : memref<8x2x4xf32, #tpu.memory_space<vmem>>, vector<1x2x4xf32>
    %6 = vector.shape_cast %5 : vector<1x2x4xf32> to vector<2x4xf32>
    %cst = arith.constant dense<0.000000e+00> : vector<2x32xf32>
    %7 = tpu.matmul %6, %0, %cst {dimension_numbers = #tpu.dot_dimension_numbers<[1], [0], [0], [1], [0, 0, 1, 1], [], []>} : vector<2x4xf32>, vector<4x32xf32>, vector<2x32xf32> -> vector<2x32xf32>
    %8 = arith.addf %7, %4 : vector<2x32xf32>
    %c1 = arith.constant 1 : index
    %c0_8 = arith.constant 0 : index
    %c0_9 = arith.constant 0 : index
    %9 = vector.load %arg1[%c1, %c0_8, %c0_9] : memref<8x2x4xf32, #tpu.memory_space<vmem>>, vector<1x2x4xf32>
    %10 = vector.shape_cast %9 : vector<1x2x4xf32> to vector<2x4xf32>
    %cst_10 = arith.constant dense<0.000000e+00> : vector<2x32xf32>
    %11 = tpu.matmul %10, %0, %cst_10 {dimension_numbers = #tpu.dot_dimension_numbers<[1], [0], [0], [1], [0, 0, 1, 1], [], []>} : vector<2x4xf32>, vector<4x32xf32>, vector<2x32xf32> -> vector<2x32xf32>
    %12 = arith.addf %11, %4 : vector<2x32xf32>
    %c2 = arith.constant 2 : index
    %c0_11 = arith.constant 0 : index
    %c0_12 = arith.constant 0 : index
    %13 = vector.load %arg1[%c2, %c0_11, %c0_12] : memref<8x2x4xf32, #tpu.memory_space<vmem>>, vector<1x2x4xf32>
    %14 = vector.shape_cast %13 : vector<1x2x4xf32> to vector<2x4xf32>
    %cst_13 = arith.constant dense<0.000000e+00> : vector<2x32xf32>
    %15 = tpu.matmul %14, %0, %cst_13 {dimension_numbers = #tpu.dot_dimension_numbers<[1], [0], [0], [1], [0, 0, 1, 1], [], []>} : vector<2x4xf32>, vector<4x32xf32>, vector<2x32xf32> -> vector<2x32xf32>
    %16 = arith.addf %15, %4 : vector<2x32xf32>
    %c3 = arith.constant 3 : index
    %c0_14 = arith.constant 0 : index
    %c0_15 = arith.constant 0 : index
    %17 = vector.load %arg1[%c3, %c0_14, %c0_15] : memref<8x2x4xf32, #tpu.memory_space<vmem>>, vector<1x2x4xf32>
    %18 = vector.shape_cast %17 : vector<1x2x4xf32> to vector<2x4xf32>
    %cst_16 = arith.constant dense<0.000000e+00> : vector<2x32xf32>
    %19 = tpu.matmul %18, %0, %cst_16 {dimension_numbers = #tpu.dot_dimension_numbers<[1], [0], [0], [1], [0, 0, 1, 1], [], []>} : vector<2x4xf32>, vector<4x32xf32>, vector<2x32xf32> -> vector<2x32xf32>
    %20 = arith.addf %19, %4 : vector<2x32xf32>
    %c4 = arith.constant 4 : index
    %c0_17 = arith.constant 0 : index
    %c0_18 = arith.constant 0 : index
    %21 = vector.load %arg1[%c4, %c0_17, %c0_18] : memref<8x2x4xf32, #tpu.memory_space<vmem>>, vector<1x2x4xf32>
    %22 = vector.shape_cast %21 : vector<1x2x4xf32> to vector<2x4xf32>
    %cst_19 = arith.constant dense<0.000000e+00> : vector<2x32xf32>
    %23 = tpu.matmul %22, %0, %cst_19 {dimension_numbers = #tpu.dot_dimension_numbers<[1], [0], [0], [1], [0, 0, 1, 1], [], []>} : vector<2x4xf32>, vector<4x32xf32>, vector<2x32xf32> -> vector<2x32xf32>
    %24 = arith.addf %23, %4 : vector<2x32xf32>
    %c5 = arith.constant 5 : index
    %c0_20 = arith.constant 0 : index
    %c0_21 = arith.constant 0 : index
    %25 = vector.load %arg1[%c5, %c0_20, %c0_21] : memref<8x2x4xf32, #tpu.memory_space<vmem>>, vector<1x2x4xf32>
    %26 = vector.shape_cast %25 : vector<1x2x4xf32> to vector<2x4xf32>
    %cst_22 = arith.constant dense<0.000000e+00> : vector<2x32xf32>
    %27 = tpu.matmul %26, %0, %cst_22 {dimension_numbers = #tpu.dot_dimension_numbers<[1], [0], [0], [1], [0, 0, 1, 1], [], []>} : vector<2x4xf32>, vector<4x32xf32>, vector<2x32xf32> -> vector<2x32xf32>
    %28 = arith.addf %27, %4 : vector<2x32xf32>
    %c6 = arith.constant 6 : index
    %c0_23 = arith.constant 0 : index
    %c0_24 = arith.constant 0 : index
    %29 = vector.load %arg1[%c6, %c0_23, %c0_24] : memref<8x2x4xf32, #tpu.memory_space<vmem>>, vector<1x2x4xf32>
    %30 = vector.shape_cast %29 : vector<1x2x4xf32> to vector<2x4xf32>
    %cst_25 = arith.constant dense<0.000000e+00> : vector<2x32xf32>
    %31 = tpu.matmul %30, %0, %cst_25 {dimension_numbers = #tpu.dot_dimension_numbers<[1], [0], [0], [1], [0, 0, 1, 1], [], []>} : vector<2x4xf32>, vector<4x32xf32>, vector<2x32xf32> -> vector<2x32xf32>
    %32 = arith.addf %31, %4 : vector<2x32xf32>
    %c7 = arith.constant 7 : index
    %c0_26 = arith.constant 0 : index
    %c0_27 = arith.constant 0 : index
    %33 = vector.load %arg1[%c7, %c0_26, %c0_27] : memref<8x2x4xf32, #tpu.memory_space<vmem>>, vector<1x2x4xf32>
    %34 = vector.shape_cast %33 : vector<1x2x4xf32> to vector<2x4xf32>
    %cst_28 = arith.constant dense<0.000000e+00> : vector<2x32xf32>
    %35 = tpu.matmul %34, %0, %cst_28 {dimension_numbers = #tpu.dot_dimension_numbers<[1], [0], [0], [1], [0, 0, 1, 1], [], []>} : vector<2x4xf32>, vector<4x32xf32>, vector<2x32xf32> -> vector<2x32xf32>
    %36 = arith.addf %35, %4 : vector<2x32xf32>
    %37 = math.tanh %8 : vector<2x32xf32>
    %cst_29 = arith.constant dense<0.000000e+00> : vector<2x32xf32>
    %38 = tpu.matmul %37, %1, %cst_29 {dimension_numbers = #tpu.dot_dimension_numbers<[1], [0], [0], [1], [0, 0, 1, 1], [], []>} : vector<2x32xf32>, vector<32x32xf32>, vector<2x32xf32> -> vector<2x32xf32>
    %39 = arith.addf %12, %38 : vector<2x32xf32>
    %40 = math.tanh %39 : vector<2x32xf32>
    %cst_30 = arith.constant dense<0.000000e+00> : vector<2x32xf32>
    %41 = tpu.matmul %40, %1, %cst_30 {dimension_numbers = #tpu.dot_dimension_numbers<[1], [0], [0], [1], [0, 0, 1, 1], [], []>} : vector<2x32xf32>, vector<32x32xf32>, vector<2x32xf32> -> vector<2x32xf32>
    %42 = arith.addf %16, %41 : vector<2x32xf32>
    %43 = math.tanh %42 : vector<2x32xf32>
    %cst_31 = arith.constant dense<0.000000e+00> : vector<2x32xf32>
    %44 = tpu.matmul %43, %1, %cst_31 {dimension_numbers = #tpu.dot_dimension_numbers<[1], [0], [0], [1], [0, 0, 1, 1], [], []>} : vector<2x32xf32>, vector<32x32xf32>, vector<2x32xf32> -> vector<2x32xf32>
    %45 = arith.addf %20, %44 : vector<2x32xf32>
    %46 = math.tanh %45 : vector<2x32xf32>
    %cst_32 = arith.constant dense<0.000000e+00> : vector<2x32xf32>
    %47 = tpu.matmul %46, %1, %cst_32 {dimension_numbers = #tpu.dot_dimension_numbers<[1], [0], [0], [1], [0, 0, 1, 1], [], []>} : vector<2x32xf32>, vector<32x32xf32>, vector<2x32xf32> -> vector<2x32xf32>
    %48 = arith.addf %24, %47 : vector<2x32xf32>
    %49 = math.tanh %48 : vector<2x32xf32>
    %cst_33 = arith.constant dense<0.000000e+00> : vector<2x32xf32>
    %50 = tpu.matmul %49, %1, %cst_33 {dimension_numbers = #tpu.dot_dimension_numbers<[1], [0], [0], [1], [0, 0, 1, 1], [], []>} : vector<2x32xf32>, vector<32x32xf32>, vector<2x32xf32> -> vector<2x32xf32>
    %51 = arith.addf %28, %50 : vector<2x32xf32>
    %52 = math.tanh %51 : vector<2x32xf32>
    %cst_34 = arith.constant dense<0.000000e+00> : vector<2x32xf32>
    %53 = tpu.matmul %52, %1, %cst_34 {dimension_numbers = #tpu.dot_dimension_numbers<[1], [0], [0], [1], [0, 0, 1, 1], [], []>} : vector<2x32xf32>, vector<32x32xf32>, vector<2x32xf32> -> vector<2x32xf32>
    %54 = arith.addf %32, %53 : vector<2x32xf32>
    %55 = math.tanh %54 : vector<2x32xf32>
    %cst_35 = arith.constant dense<0.000000e+00> : vector<2x32xf32>
    %56 = tpu.matmul %55, %1, %cst_35 {dimension_numbers = #tpu.dot_dimension_numbers<[1], [0], [0], [1], [0, 0, 1, 1], [], []>} : vector<2x32xf32>, vector<32x32xf32>, vector<2x32xf32> -> vector<2x32xf32>
    %57 = arith.addf %36, %56 : vector<2x32xf32>
    %58 = math.tanh %57 : vector<2x32xf32>
    %c0_36 = arith.constant 0 : index
    %c0_37 = arith.constant 0 : index
    %59 = vector.load %arg5[%c0_36, %c0_37] : memref<32x32xf32, #tpu.memory_space<vmem>>, vector<32x32xf32>
    %c0_38 = arith.constant 0 : index
    %c0_39 = arith.constant 0 : index
    %60 = vector.load %arg6[%c0_38, %c0_39] : memref<1x32xf32, #tpu.memory_space<vmem>>, vector<1x32xf32>
    %61 = vector.shape_cast %60 : vector<1x32xf32> to vector<1x32xf32>
    %62 = vector.broadcast %61 : vector<1x32xf32> to vector<2x32xf32>
    %cst_40 = arith.constant dense<0.000000e+00> : vector<2x32xf32>
    %63 = tpu.matmul %58, %59, %cst_40 {dimension_numbers = #tpu.dot_dimension_numbers<[1], [0], [0], [1], [0, 0, 1, 1], [], []>} : vector<2x32xf32>, vector<32x32xf32>, vector<2x32xf32> -> vector<2x32xf32>
    %64 = arith.addf %63, %62 : vector<2x32xf32>
    %65 = math.tanh %64 : vector<2x32xf32>
    %cst_41 = arith.constant dense<0.000000e+00> : vector<2x32xf32>
    %66 = tpu.matmul %65, %59, %cst_41 {dimension_numbers = #tpu.dot_dimension_numbers<[1], [0], [0], [1], [0, 0, 1, 1], [], []>} : vector<2x32xf32>, vector<32x32xf32>, vector<2x32xf32> -> vector<2x32xf32>
    %67 = arith.addf %66, %62 : vector<2x32xf32>
    %68 = math.tanh %67 : vector<2x32xf32>
    %cst_42 = arith.constant dense<0.000000e+00> : vector<2x32xf32>
    %69 = tpu.matmul %68, %59, %cst_42 {dimension_numbers = #tpu.dot_dimension_numbers<[1], [0], [0], [1], [0, 0, 1, 1], [], []>} : vector<2x32xf32>, vector<32x32xf32>, vector<2x32xf32> -> vector<2x32xf32>
    %70 = arith.addf %69, %62 : vector<2x32xf32>
    %71 = math.tanh %70 : vector<2x32xf32>
    %cst_43 = arith.constant dense<0.000000e+00> : vector<2x32xf32>
    %72 = tpu.matmul %71, %59, %cst_43 {dimension_numbers = #tpu.dot_dimension_numbers<[1], [0], [0], [1], [0, 0, 1, 1], [], []>} : vector<2x32xf32>, vector<32x32xf32>, vector<2x32xf32> -> vector<2x32xf32>
    %73 = arith.addf %72, %62 : vector<2x32xf32>
    %74 = math.tanh %73 : vector<2x32xf32>
    %cst_44 = arith.constant dense<0.000000e+00> : vector<2x32xf32>
    %75 = tpu.matmul %74, %59, %cst_44 {dimension_numbers = #tpu.dot_dimension_numbers<[1], [0], [0], [1], [0, 0, 1, 1], [], []>} : vector<2x32xf32>, vector<32x32xf32>, vector<2x32xf32> -> vector<2x32xf32>
    %76 = arith.addf %75, %62 : vector<2x32xf32>
    %77 = math.tanh %76 : vector<2x32xf32>
    %cst_45 = arith.constant dense<0.000000e+00> : vector<2x32xf32>
    %78 = tpu.matmul %77, %59, %cst_45 {dimension_numbers = #tpu.dot_dimension_numbers<[1], [0], [0], [1], [0, 0, 1, 1], [], []>} : vector<2x32xf32>, vector<32x32xf32>, vector<2x32xf32> -> vector<2x32xf32>
    %79 = arith.addf %78, %62 : vector<2x32xf32>
    %80 = math.tanh %79 : vector<2x32xf32>
    %cst_46 = arith.constant dense<0.000000e+00> : vector<2x32xf32>
    %81 = tpu.matmul %80, %59, %cst_46 {dimension_numbers = #tpu.dot_dimension_numbers<[1], [0], [0], [1], [0, 0, 1, 1], [], []>} : vector<2x32xf32>, vector<32x32xf32>, vector<2x32xf32> -> vector<2x32xf32>
    %82 = arith.addf %81, %62 : vector<2x32xf32>
    %83 = math.tanh %82 : vector<2x32xf32>
    %cst_47 = arith.constant dense<0.000000e+00> : vector<2x32xf32>
    %84 = tpu.matmul %83, %59, %cst_47 {dimension_numbers = #tpu.dot_dimension_numbers<[1], [0], [0], [1], [0, 0, 1, 1], [], []>} : vector<2x32xf32>, vector<32x32xf32>, vector<2x32xf32> -> vector<2x32xf32>
    %85 = arith.addf %84, %62 : vector<2x32xf32>
    %86 = math.tanh %85 : vector<2x32xf32>
    %87 = tpu.concatenate %65, %68, %71, %74, %77, %80, %83, %86 in 0 : vector<2x32xf32>, vector<2x32xf32>, vector<2x32xf32>, vector<2x32xf32>, vector<2x32xf32>, vector<2x32xf32>, vector<2x32xf32>, vector<2x32xf32> -> vector<16x32xf32>
    %c0_48 = arith.constant 0 : index
    %c0_49 = arith.constant 0 : index
    %88 = vector.load %arg7[%c0_48, %c0_49] : memref<32x4xf32, #tpu.memory_space<vmem>>, vector<32x4xf32>
    %cst_50 = arith.constant dense<0.000000e+00> : vector<16x4xf32>
    %89 = tpu.matmul %87, %88, %cst_50 {dimension_numbers = #tpu.dot_dimension_numbers<[1], [0], [0], [1], [0, 0, 1, 1], [], []>} : vector<16x32xf32>, vector<32x4xf32>, vector<16x4xf32> -> vector<16x4xf32>
    %c0_51 = arith.constant 0 : index
    %c0_52 = arith.constant 0 : index
    %90 = vector.load %arg8[%c0_51, %c0_52] : memref<1x4xf32, #tpu.memory_space<vmem>>, vector<1x4xf32>
    %91 = vector.broadcast %90 : vector<1x4xf32> to vector<16x4xf32>
    %92 = arith.addf %89, %91 : vector<16x4xf32>
    %93 = vector.shape_cast %92 : vector<16x4xf32> to vector<8x2x4xf32>
    %c0_53 = arith.constant 0 : index
    %c0_54 = arith.constant 0 : index
    %c0_55 = arith.constant 0 : index
    %94 = vector.load %arg9[%c0_53, %c0_54, %c0_55] : memref<8x2x4xf32, #tpu.memory_space<vmem>>, vector<8x2x4xf32>
    tpu.vector_store %arg9[%c0_53, %c0_54, %c0_55], %93 {strides = array<i32>} : memref<8x2x4xf32, #tpu.memory_space<vmem>>, vector<8x2x4xf32>,
    return
  }
  func.func @transform_0(%arg0: i32) -> (i32, i32, i32) {
    %c0_i32 = arith.constant 0 : i32
    %c0_i32_0 = arith.constant 0 : i32
    %c0_i32_1 = arith.constant 0 : i32
    return %c0_i32, %arg0, %c0_i32_0 : i32, i32, i32
  }
  func.func @transform_1(%arg0: i32) -> (i32, i32) {
    %c0_i32 = arith.constant 0 : i32
    %c0_i32_0 = arith.constant 0 : i32
    %c0_i32_1 = arith.constant 0 : i32
    return %c0_i32, %c0_i32_0 : i32, i32
  }
  func.func @transform_2(%arg0: i32) -> (i32, i32) {
    %c0_i32 = arith.constant 0 : i32
    %c0_i32_0 = arith.constant 0 : i32
    %c0_i32_1 = arith.constant 0 : i32
    return %c0_i32, %c0_i32_0 : i32, i32
  }
  func.func @transform_3(%arg0: i32) -> (i32, i32) {
    %c0_i32 = arith.constant 0 : i32
    %c0_i32_0 = arith.constant 0 : i32
    %c0_i32_1 = arith.constant 0 : i32
    return %c0_i32, %c0_i32_0 : i32, i32
  }
  func.func @transform_4(%arg0: i32) -> (i32, i32) {
    %c0_i32 = arith.constant 0 : i32
    %c0_i32_0 = arith.constant 0 : i32
    %c0_i32_1 = arith.constant 0 : i32
    return %c0_i32, %c0_i32_0 : i32, i32
  }
  func.func @transform_5(%arg0: i32) -> (i32, i32) {
    %c0_i32 = arith.constant 0 : i32
    %c0_i32_0 = arith.constant 0 : i32
    %c0_i32_1 = arith.constant 0 : i32
    return %c0_i32, %c0_i32_0 : i32, i32
  }
  func.func @transform_6(%arg0: i32) -> (i32, i32) {
    %c0_i32 = arith.constant 0 : i32
    %c0_i32_0 = arith.constant 0 : i32
    %c0_i32_1 = arith.constant 0 : i32
    return %c0_i32, %c0_i32_0 : i32, i32
  }
  func.func @transform_7(%arg0: i32) -> (i32, i32) {
    %c0_i32 = arith.constant 0 : i32
    %c0_i32_0 = arith.constant 0 : i32
    %c0_i32_1 = arith.constant 0 : i32
    return %c0_i32, %c0_i32_0 : i32, i32
  }
  func.func @transform_8(%arg0: i32) -> (i32, i32, i32) {
    %c0_i32 = arith.constant 0 : i32
    %c0_i32_0 = arith.constant 0 : i32
    %c0_i32_1 = arith.constant 0 : i32
    return %c0_i32, %arg0, %c0_i32_0 : i32, i32, i32
  }
}

</mosaic_0001>

<bundles_post_ra>
// kernel: _lambda_.1
= control target key start
LH: loop header
LB: loop body
LE: loop exit
PB: predicated region body
PF: predicated region fallthrough
CT: control target
= control target key end

     0   :  { %13 = vsyncpa [#allocation3], 0  ;;  %s1063_s0 = inlined_call_operand.vmem [shape: f32[8,2,4], index: 0, kind: input, shape index: {}]   ;;  %s1064_s1 = inlined_call_operand.vmem [shape: f32[4,32], index: 1, kind: input, shape index: {}]   ;;  %s1065_s2 = inlined_call_operand.vmem [shape: f32[32,32], index: 2, kind: input, shape index: {}]   ;;  %s1066_s3 = inlined_call_operand.vmem [shape: f32[1,32], index: 3, kind: input, shape index: {}]   ;;  %s1067_s4 = inlined_call_operand.hbm [shape: f32[32,32], index: 4, kind: input, shape index: {}]   ;;  %s1068_s5 = inlined_call_operand.vmem [shape: f32[1,32], index: 5, kind: input, shape index: {}]   ;;  %s1069_s6 = inlined_call_operand.hbm [shape: f32[32,4], index: 6, kind: input, shape index: {}]   ;;  %s1070_s7 = inlined_call_operand.vmem [shape: f32[1,4], index: 7, kind: input, shape index: {}]   ;;  %s1071_s8 = inlined_call_operand.vmem [shape: f32[8,2,4], index: 8, kind: output, shape index: {}]  }
   0x1   :  { %s27_s29 = sshll.u32 %s1067_s4, 4  ;;  %s28_s29 = int_to_ptr.hbm [resolvable:$true] %s27_s29 }
   0x2   :  { %14 = vsyncpa [#allocation5], 0  ;;  %s869_s30 = smov [#allocation2]   ;;  %s42_s12 = sshll.u32 %s1069_s6, 4  ;;  %s43_s12 = int_to_ptr.hbm [resolvable:$true] %s42_s12 }
   0x3   :  { %s29_s9 = sshll.u32 %s869_s30, 4  ;;  %s870_s13 = smov 128   ;;  %s30_s9 = int_to_ptr.vmem [resolvable:$true] %s29_s9 }
   0x4   :  { %s871_s14 = smov 8   ;;  %s872_s15 = smov [#allocation4]  }
   0x5   :  { %35 = dma.hbm_to_vmem [thread:$0]  %s28_s29, 512, %s30_s9, [#allocation3], %s870_s13, %s870_s13, %s871_s14  }
   0x6   :  { %s44_s16 = sshll.u32 %s872_s15, 4  ;;  %s45_s16 = int_to_ptr.vmem [resolvable:$true] %s44_s16 }
   0x7   :  { %50 = dma.hbm_to_vmem [thread:$0]  %s43_s12, 512, %s45_s16, [#allocation5], %s870_s13, %s870_s13, %s871_s14  }
   0x8   :  { %865 = dma.done.wait [#allocation3], 512  }
   0x9   :  { %866 = vsyncadd [#allocation3], 4294966784 }
   0xa   :  { %867 = dma.done.wait [#allocation5], 512  }
   0xb   :  { %868 = vsyncadd [#allocation5], 4294966784  ;;  %vm75_vm0 = vcmask 1043456   ;;  %vm71_vm1 = vcmask 31744   ;;  %v61_v0 = vld [vmem:[%s1064_s1] sm:$0xf] }
   0xc   :  { %v70_v1 = vld [vmem:[%s1063_s0] sm:$0x3]  ;;  %738 = vmatpush.msk.msra.mxu0 %vm75_vm0, %v61_v0  ;;  %741 = vmatpush.msk.msra.mxu1 %vm75_vm0, %v61_v0  ;;  %v749_v2 = vld [vmem:[%s1063_s0 + $0x8] sm:$0x3]  ;;  %v65_v3 = vld [vmem:[%s1065_s2 + $0x18] sm:$0xff]  ;;  %vm275_vm2 = vcmask 261120  }
   0xd   :  { %739 = vmatmul.msk.f32.vlgmr.msra.gmra.mxu0 %vm71_vm1, %v70_v1  ;;  %744 = vmatpush.msk.msra.mxu2 %vm75_vm0, %v61_v0  ;;  %v64_v4 = vld [vmem:[%s1065_s2 + $0x10] sm:$0xff]  ;;  %v740_v5 = vld [vmem:[%s1063_s0 + $0x2] sm:$0x3]  ;;  %v63_v6 = vld [vmem:[%s1065_s2 + $0x8] sm:$0xff]  ;;  %vm664_vm3 = vcmask 1041408   ;;  %vm667_vm4 = vcmask 1045504  }
   0xe   :  { %753 = vmatpush.msk.msrb.mxu1 %vm75_vm0, %v61_v0  ;;  %750 = vmatpush.msk.msrb.mxu0 %vm75_vm0, %v61_v0  ;;  %v62_v7 = vld [vmem:[%s1065_s2] sm:$0xff]  ;;  %v752_v13 = vld [vmem:[%s1063_s0 + $0xa] sm:$0x3]  ;;  %v755_v20 = vld [vmem:[%s1063_s0 + $0xc] sm:$0x3]  ;;  %vm723_vm5 = vcmask 25600  }
   0xf   :  { %756 = vmatpush.msk.msrb.mxu2 %vm75_vm0, %v61_v0  ;;  %747 = vmatpush.msk.msra.mxu3 %vm75_vm0, %v61_v0  ;;  %v962_v8 = vld [vmem:[%s1066_s3] ss:$0 sm:$0xff]  ;;  %v743_v12 = vld [vmem:[%s1063_s0 + $0x4] sm:$0x3]  ;;  %v746_v21 = vld [vmem:[%s1063_s0 + $0x6] sm:$0x3] }
  0x10   :  { %291 = vmatpush.msra.mxu0 %v65_v3  ;;  %742 = vmatmul.msk.f32.vlgmr.msra.gmra.mxu1 %vm71_vm1, %v740_v5  ;;  %v758_v28 = vld [vmem:[%s1063_s0 + $0xe] sm:$0x3]  ;;  %v454_v48 = vld [vmem:[#allocation2 + $0x18] sm:$0xff]  ;;  %v453_v49 = vld [vmem:[#allocation2 + $0x10] sm:$0xff] }
  0x11   :  { %759 = vmatpush.msk.msrb.mxu3 %vm75_vm0, %v61_v0  ;;  %316 = vmatpush.msra.mxu1 %v65_v3  ;;  %v452_v50 = vld [vmem:[#allocation2 + $0x8] sm:$0xff]  ;;  %v451_v51 = vld [vmem:[#allocation2] sm:$0xff] }
  0x12   :  { %292 = vmatpush.msra.mxu0 %v64_v4  ;;  %745 = vmatmul.msk.f32.vlgmr.msra.gmra.mxu2 %vm71_vm1, %v743_v12  ;;  %v1003_v56 = vld [vmem:[%s1068_s5] ss:$0 sm:$0xff] }
  0x13   :  { %317 = vmatpush.msra.mxu1 %v64_v4  ;;  %341 = vmatpush.msra.mxu2 %v65_v3 }
  0x14   :  { %293 = vmatpush.msra.mxu0 %v63_v6  ;;  %748 = vmatmul.msk.f32.vlgmr.msra.gmra.mxu3 %vm71_vm1, %v746_v21 }
  0x15   :  { %751 = vmatmul.msk.f32.vlgmr.msrb.gmra.mxu0 %vm71_vm1, %v749_v2  ;;  %318 = vmatpush.msra.mxu1 %v63_v6 }
  0x16   :  { %294 = vmatpush.msra.mxu0 %v62_v7  ;;  %342 = vmatpush.msra.mxu2 %v64_v4 }
  0x17   :  { %319 = vmatpush.msra.mxu1 %v62_v7  ;;  %366 = vmatpush.msra.mxu3 %v65_v3 }
  0x18   :  { %391 = vmatpush.msrb.mxu0 %v65_v3  ;;  %754 = vmatmul.msk.f32.vlgmr.msrb.gmra.mxu1 %vm71_vm1, %v752_v13 }
  0x19   :  { %416 = vmatpush.msrb.mxu1 %v65_v3  ;;  %343 = vmatpush.msra.mxu2 %v63_v6 }
  0x1a   :  { %392 = vmatpush.msrb.mxu0 %v64_v4  ;;  %757 = vmatmul.msk.f32.vlgmr.msrb.gmra.mxu2 %vm71_vm1, %v755_v20 }
  0x1b   :  { %417 = vmatpush.msrb.mxu1 %v64_v4  ;;  %344 = vmatpush.msra.mxu2 %v62_v7 }
  0x1c   :  { %393 = vmatpush.msrb.mxu0 %v63_v6  ;;  %367 = vmatpush.msra.mxu3 %v64_v4 }
  0x1d   :  { %418 = vmatpush.msrb.mxu1 %v63_v6  ;;  %441 = vmatpush.msrb.mxu2 %v65_v3 }
  0x1e   :  { %394 = vmatpush.msrb.mxu0 %v62_v7  ;;  %368 = vmatpush.msra.mxu3 %v63_v6 }
  0x1f   :  { %419 = vmatpush.msrb.mxu1 %v62_v7  ;;  %442 = vmatpush.msrb.mxu2 %v64_v4 }
  0x20   :  { %369 = vmatpush.msra.mxu3 %v62_v7 }
  0x21   :  { %443 = vmatpush.msrb.mxu2 %v63_v6  ;;  %760 = vmatmul.msk.f32.vlgmr.msrb.gmra.mxu3 %vm71_vm1, %v758_v28  ;;  %v675_v6 = vld [vmem:[#allocation4 + $0x18] sm:$0xff] }
  0x22   :  { %474 = vmatpush.msrb.mxu3 %v454_v48 }
  0x23   :  { %444 = vmatpush.msrb.mxu2 %v62_v7  ;;  %v674_v7 = vld [vmem:[#allocation4 + $0x10] sm:$0xff] }
  0x24   :  { %475 = vmatpush.msrb.mxu3 %v453_v49 }
  0x26   :  { %476 = vmatpush.msrb.mxu3 %v452_v50 }
  0x28   :  { %477 = vmatpush.msrb.mxu3 %v451_v51 }
  0x8a   :  { %v96_v9 = vpop.f32.mrf.mxu0 }
  0x8b   :  { %v97_v10 = vadd.f32 %v962_v8, %v96_v9  ;;  %v672_v9 = vld [vmem:[#allocation4] sm:$0xff] }
  0x8d   :  { %785 = vtanh.f32 %v97_v10  ;;  %v121_v15 = vpop.f32.mrf.mxu1 }
  0x8e   :  { %v122_v16 = vadd.f32 %v962_v8, %v121_v15 }
  0x92   :  { %v196_v14 = vpop.f32.mrf.mxu0 }
  0x93   :  { %v786_v11 = vpop.eup %785  ;;  %v197_v36 = vadd.f32 %v962_v8, %v196_v14 }
  0x94   :  { %761 = vmatmul.msk.f32.vlgmr.msra.gmra.mxu0 %vm275_vm2, %v786_v11 }
  0x95   :  { %v221_v22 = vpop.f32.mrf.mxu1  ;;  %v146_v23 = vpop.f32.mrf.mxu2  ;;  %498 = vmatpush.msra.mxu0 %v454_v48 }
  0x96   :  { %v147_v24 = vadd.f32 %v962_v8, %v146_v23  ;;  %v222_v40 = vadd.f32 %v962_v8, %v221_v22 }
  0x97   :  { %v171_v30 = vpop.f32.mrf.mxu3  ;;  %499 = vmatpush.msra.mxu0 %v453_v49 }
  0x98   :  { %v172_v31 = vadd.f32 %v962_v8, %v171_v30 }
  0x99   :  { %500 = vmatpush.msra.mxu0 %v452_v50 }
  0x9b   :  { %501 = vmatpush.msra.mxu0 %v451_v51 }
  0x9d   :  { %v246_v29 = vpop.f32.mrf.mxu2 }
  0x9e   :  { %v247_v44 = vadd.f32 %v962_v8, %v246_v29 }
  0xa4   :  { %v271_v35 = vpop.f32.mrf.mxu3 }
  0xa5   :  { %v272_v52 = vadd.f32 %v962_v8, %v271_v35  ;;  %v673_v8 = vld [vmem:[#allocation4 + $0x8] sm:$0xff] }
 0x111   :  { %v296_v17 = vpop.f32.mrf.mxu0 }
 0x112   :  { %v299_v18 = vadd.f32 %v296_v17, %v122_v16  ;;  %v784_v17 = vld [vmem:[%s1070_s7] ss:$0 sm:$0xff] }
 0x114   :  { %787 = vtanh.f32 %v299_v18 }
 0x11a   :  { %v788_v19 = vpop.eup %787 }
 0x11b   :  { %762 = vmatmul.msk.f32.vlgmr.msra.gmra.mxu1 %vm275_vm2, %v788_v19 }
 0x11c   :  { %522 = vmatpush.msra.mxu1 %v454_v48 }
 0x11e   :  { %523 = vmatpush.msra.mxu1 %v453_v49 }
 0x120   :  { %524 = vmatpush.msra.mxu1 %v452_v50 }
 0x122   :  { %525 = vmatpush.msra.mxu1 %v451_v51 }
 0x198   :  { %v321_v25 = vpop.f32.mrf.mxu1 }
 0x199   :  { %v324_v26 = vadd.f32 %v321_v25, %v147_v24 }
 0x19b   :  { %789 = vtanh.f32 %v324_v26 }
 0x1a1   :  { %v790_v27 = vpop.eup %789 }
 0x1a2   :  { %763 = vmatmul.msk.f32.vlgmr.msra.gmra.mxu2 %vm275_vm2, %v790_v27 }
 0x1a3   :  { %546 = vmatpush.msra.mxu2 %v454_v48 }
 0x1a5   :  { %547 = vmatpush.msra.mxu2 %v453_v49 }
 0x1a7   :  { %548 = vmatpush.msra.mxu2 %v452_v50 }
 0x1a9   :  { %549 = vmatpush.msra.mxu2 %v451_v51 }
 0x225   :  { %v346_v32 = vpop.f32.mrf.mxu2 }
 0x226   :  { %v349_v33 = vadd.f32 %v346_v32, %v172_v31 }
 0x228   :  { %791 = vtanh.f32 %v349_v33 }
 0x22e   :  { %v792_v34 = vpop.eup %791 }
 0x22f   :  { %764 = vmatmul.msk.f32.vlgmr.msra.gmra.mxu3 %vm275_vm2, %v792_v34 }
 0x230   :  { %570 = vmatpush.msra.mxu3 %v454_v48 }
 0x232   :  { %571 = vmatpush.msra.mxu3 %v453_v49 }
 0x234   :  { %572 = vmatpush.msra.mxu3 %v452_v50 }
 0x236   :  { %573 = vmatpush.msra.mxu3 %v451_v51 }
 0x2b2   :  { %v371_v37 = vpop.f32.mrf.mxu3 }
 0x2b3   :  { %v374_v38 = vadd.f32 %v371_v37, %v197_v36 }
 0x2b5   :  { %793 = vtanh.f32 %v374_v38 }
 0x2bb   :  { %v794_v39 = vpop.eup %793 }
 0x2bc   :  { %765 = vmatmul.msk.f32.vlgmr.msrb.gmra.mxu0 %vm275_vm2, %v794_v39 }
 0x2bd   :  { %594 = vmatpush.msrb.mxu0 %v454_v48 }
 0x2bf   :  { %595 = vmatpush.msrb.mxu0 %v453_v49 }
 0x2c1   :  { %596 = vmatpush.msrb.mxu0 %v452_v50 }
 0x2c3   :  { %597 = vmatpush.msrb.mxu0 %v451_v51 }
 0x339   :  { %v396_v41 = vpop.f32.mrf.mxu0 }
 0x33a   :  { %v399_v42 = vadd.f32 %v396_v41, %v222_v40 }
 0x33c   :  { %795 = vtanh.f32 %v399_v42 }
 0x342   :  { %v796_v43 = vpop.eup %795 }
 0x343   :  { %766 = vmatmul.msk.f32.vlgmr.msrb.gmra.mxu1 %vm275_vm2, %v796_v43 }
 0x344   :  { %618 = vmatpush.msrb.mxu1 %v454_v48 }
 0x346   :  { %619 = vmatpush.msrb.mxu1 %v453_v49 }
 0x348   :  { %620 = vmatpush.msrb.mxu1 %v452_v50 }
 0x34a   :  { %621 = vmatpush.msrb.mxu1 %v451_v51 }
 0x3c0   :  { %v421_v45 = vpop.f32.mrf.mxu1 }
 0x3c1   :  { %v424_v46 = vadd.f32 %v421_v45, %v247_v44 }
 0x3c3   :  { %797 = vtanh.f32 %v424_v46 }
 0x3c9   :  { %v798_v47 = vpop.eup %797 }
 0x3ca   :  { %767 = vmatmul.msk.f32.vlgmr.msrb.gmra.mxu2 %vm275_vm2, %v798_v47 }
 0x3cb   :  { %642 = vmatpush.msrb.mxu2 %v454_v48 }
 0x3cd   :  { %643 = vmatpush.msrb.mxu2 %v453_v49 }
 0x3cf   :  { %644 = vmatpush.msrb.mxu2 %v452_v50 }
 0x3d1   :  { %645 = vmatpush.msrb.mxu2 %v451_v51 }
 0x44d   :  { %v446_v53 = vpop.f32.mrf.mxu2 }
 0x44e   :  { %v449_v54 = vadd.f32 %v446_v53, %v272_v52 }
 0x450   :  { %799 = vtanh.f32 %v449_v54 }
 0x456   :  { %v800_v55 = vpop.eup %799 }
 0x457   :  { %768 = vmatmul.msk.f32.vlgmr.msrb.gmra.mxu3 %vm275_vm2, %v800_v55 }
 0x458   :  { %698 = vmatpush.msrb.mxu3 %v675_v6 }
 0x45a   :  { %699 = vmatpush.msrb.mxu3 %v674_v7 }
 0x45c   :  { %700 = vmatpush.msrb.mxu3 %v673_v8 }
 0x45e   :  { %701 = vmatpush.msrb.mxu3 %v672_v9 }
 0x4da   :  { %v479_v57 = vpop.f32.mrf.mxu3 }
 0x4db   :  { %v480_v58 = vadd.f32 %v1003_v56, %v479_v57 }
 0x4dd   :  { %801 = vtanh.f32 %v480_v58 }
 0x4e3   :  { %v802_v59 = vpop.eup %801 }
 0x4e4   :  { %769 = vmatmul.msk.f32.vlgmr.msra.gmra.mxu0 %vm275_vm2, %v802_v59 }
 0x561   :  { %v503_v60 = vpop.f32.mrf.mxu0 }
 0x562   :  { %v504_v61 = vadd.f32 %v1003_v56, %v503_v60 }
 0x564   :  { %803 = vtanh.f32 %v504_v61 }
 0x56a   :  { %v804_v62 = vpop.eup %803 }
 0x56b   :  { %770 = vmatmul.msk.f32.vlgmr.msra.gmra.mxu1 %vm275_vm2, %v804_v62  ;;  %v651_v1 = vrot.slane %v804_v62, 6 }
 0x56d   :  { %v665_v4 = vsel %vm664_vm3, %v802_v59, %v651_v1 }
 0x5e8   :  { %v527_v63 = vpop.f32.mrf.mxu1 }
 0x5e9   :  { %v528_v0 = vadd.f32 %v1003_v56, %v527_v63 }
 0x5eb   :  { %805 = vtanh.f32 %v528_v0 }
 0x5f1   :  { %v806_v2 = vpop.eup %805 }
 0x5f2   :  { %v653_v3 = vrot.slane %v806_v2, 4  ;;  %771 = vmatmul.msk.f32.vlgmr.msra.gmra.mxu2 %vm275_vm2, %v806_v2 }
 0x5f4   :  { %v666_v5 = vsel %vm75_vm0, %v665_v4, %v653_v3 }
 0x675   :  { %v551_v10 = vpop.f32.mrf.mxu2 }
 0x676   :  { %v552_v11 = vadd.f32 %v1003_v56, %v551_v10 }
 0x678   :  { %807 = vtanh.f32 %v552_v11 }
 0x67e   :  { %v808_v12 = vpop.eup %807 }
 0x67f   :  { %772 = vmatmul.msk.f32.vlgmr.msra.gmra.mxu3 %vm275_vm2, %v808_v12  ;;  %v655_v13 = vrot.slane %v808_v12, 2 }
 0x681   :  { %v668_v14 = vsel %vm667_vm4, %v666_v5, %v655_v13 }
 0x687   :  { %776 = vmatmul.msk.f32.vlgmr.msrb.gmra.mxu3 %vm275_vm2, %v668_v14 }
 0x702   :  { %v575_v15 = vpop.f32.mrf.mxu3 }
 0x703   :  { %v576_v16 = vadd.f32 %v1003_v56, %v575_v15 }
 0x705   :  { %809 = vtanh.f32 %v576_v16 }
 0x70a   :  { %v703_v18 = vpop.f32.mrf.mxu3 }
 0x70b   :  { %v810_v19 = vpop.eup %809  ;;  %v704_v20 = vadd.f32 %v784_v17, %v703_v18 }
 0x70c   :  { %773 = vmatmul.msk.f32.vlgmr.msrb.gmra.mxu0 %vm275_vm2, %v810_v19 }
 0x70d   :  { %v711_v21 = vrot.slane %v704_v20, 2  ;;  %v712_v22 = vrot.slane %v704_v20, 4  ;;  %v713_v23 = vrot.slane %v704_v20, 6  ;;  %724 = vst.msk [vmem:[%s1071_s8] sm:$0x3] %vm723_vm5, %v704_v20 }
 0x70f   :  { %725 = vst.msk [vmem:[%s1071_s8 + $0x2] sm:$0x3] %vm723_vm5, %v711_v21 }
 0x710   :  { %726 = vst.msk [vmem:[%s1071_s8 + $0x4] sm:$0x3] %vm723_vm5, %v712_v22 }
 0x711   :  { %727 = vst.msk [vmem:[%s1071_s8 + $0x6] sm:$0x3] %vm723_vm5, %v713_v23 }
 0x789   :  { %v599_v24 = vpop.f32.mrf.mxu0 }
 0x78a   :  { %v600_v25 = vadd.f32 %v1003_v56, %v599_v24 }
 0x78c   :  { %811 = vtanh.f32 %v600_v25 }
 0x792   :  { %v812_v26 = vpop.eup %811 }
 0x793   :  { %774 = vmatmul.msk.f32.vlgmr.msrb.gmra.mxu1 %vm275_vm2, %v812_v26  ;;  %v657_v29 = vrot.slane %v812_v26, 6 }
 0x795   :  { %v669_v32 = vsel %vm664_vm3, %v810_v19, %v657_v29 }
 0x810   :  { %v623_v27 = vpop.f32.mrf.mxu1 }
 0x811   :  { %v624_v28 = vadd.f32 %v1003_v56, %v623_v27 }
 0x813   :  { %813 = vtanh.f32 %v624_v28 }
 0x819   :  { %v814_v30 = vpop.eup %813 }
 0x81a   :  { %v659_v31 = vrot.slane %v814_v30, 4  ;;  %775 = vmatmul.msk.f32.vlgmr.msrb.gmra.mxu2 %vm275_vm2, %v814_v30 }
 0x81c   :  { %v670_v33 = vsel %vm75_vm0, %v669_v32, %v659_v31 }
 0x89d   :  { %v647_v34 = vpop.f32.mrf.mxu2 }
 0x89e   :  { %v648_v35 = vadd.f32 %v1003_v56, %v647_v34 }
 0x8a0   :  { %815 = vtanh.f32 %v648_v35 }
 0x8a6   :  { %v816_v36 = vpop.eup %815 }
 0x8a7   :  { %v662_v37 = vrot.slane %v816_v36, 2 }
 0x8a9   :  { %v671_v38 = vsel %vm667_vm4, %v670_v33, %v662_v37 }
 0x8aa   :  { %777 = vmatmul.msk.f32.gmra.mxu3 %vm275_vm2, %v671_v38 }
 0x92d   :  { %v706_v39 = vpop.f32.mrf.mxu3 }
 0x92e   :  { %v707_v40 = vadd.f32 %v784_v17, %v706_v39 }
 0x930   :  { %v714_v41 = vrot.slane %v707_v40, 2  ;;  %v715_v42 = vrot.slane %v707_v40, 4  ;;  %v716_v43 = vrot.slane %v707_v40, 6  ;;  %728 = vst.msk [vmem:[%s1071_s8 + $0x8] sm:$0x3] %vm723_vm5, %v707_v40 }
 0x932   :  { %729 = vst.msk [vmem:[%s1071_s8 + $0xa] sm:$0x3] %vm723_vm5, %v714_v41 }
 0x933   :  { %730 = vst.msk [vmem:[%s1071_s8 + $0xc] sm:$0x3] %vm723_vm5, %v715_v42 }
 0x934   :  { %731 = vst.msk [vmem:[%s1071_s8 + $0xe] sm:$0x3] %vm723_vm5, %v716_v43 }
 0x935   :  { %736 = vsyncpa [#allocation3], 1 }
 0x936   :  { %737 = vsyncpa [#allocation5], 1 }

// kernel: _lambda_.1
= control target key start
LH: loop header
LB: loop body
LE: loop exit
PB: predicated region body
PF: predicated region fallthrough
CT: control target
= control target key end

     0   :  { %13 = vsyncpa [#allocation3], 0  ;;  %s1063_s0 = inlined_call_operand.vmem [shape: f32[8,2,4], index: 0, kind: input, shape index: {}]   ;;  %s1064_s1 = inlined_call_operand.vmem [shape: f32[4,32], index: 1, kind: input, shape index: {}]   ;;  %s1065_s2 = inlined_call_operand.vmem [shape: f32[32,32], index: 2, kind: input, shape index: {}]   ;;  %s1066_s3 = inlined_call_operand.vmem [shape: f32[1,32], index: 3, kind: input, shape index: {}]   ;;  %s1067_s4 = inlined_call_operand.hbm [shape: f32[32,32], index: 4, kind: input, shape index: {}]   ;;  %s1068_s5 = inlined_call_operand.vmem [shape: f32[1,32], index: 5, kind: input, shape index: {}]   ;;  %s1069_s6 = inlined_call_operand.hbm [shape: f32[32,4], index: 6, kind: input, shape index: {}]   ;;  %s1070_s7 = inlined_call_operand.vmem [shape: f32[1,4], index: 7, kind: input, shape index: {}]   ;;  %s1071_s8 = inlined_call_operand.vmem [shape: f32[8,2,4], index: 8, kind: output, shape index: {}]  }
   0x1   :  { %s27_s29 = sshll.u32 %s1067_s4, 4  ;;  %s28_s29 = int_to_ptr.hbm [resolvable:$true] %s27_s29 }
   0x2   :  { %14 = vsyncpa [#allocation5], 0  ;;  %s869_s30 = smov [#allocation2]   ;;  %s42_s12 = sshll.u32 %s1069_s6, 4  ;;  %s43_s12 = int_to_ptr.hbm [resolvable:$true] %s42_s12 }
   0x3   :  { %s29_s9 = sshll.u32 %s869_s30, 4  ;;  %s870_s13 = smov 128   ;;  %s30_s9 = int_to_ptr.vmem [resolvable:$true] %s29_s9 }
   0x4   :  { %s871_s14 = smov 8   ;;  %s872_s15 = smov [#allocation4]  }
   0x5   :  { %35 = dma.hbm_to_vmem [thread:$0]  %s28_s29, 512, %s30_s9, [#allocation3], %s870_s13, %s870_s13, %s871_s14  }
   0x6   :  { %s44_s16 = sshll.u32 %s872_s15, 4  ;;  %s45_s16 = int_to_ptr.vmem [resolvable:$true] %s44_s16 }
   0x7   :  { %50 = dma.hbm_to_vmem [thread:$0]  %s43_s12, 512, %s45_s16, [#allocation5], %s870_s13, %s870_s13, %s871_s14  }
   0x8   :  { %865 = dma.done.wait [#allocation3], 512  }
   0x9   :  { %866 = vsyncadd [#allocation3], 4294966784 }
   0xa   :  { %867 = dma.done.wait [#allocation5], 512  }
   0xb   :  { %868 = vsyncadd [#allocation5], 4294966784  ;;  %vm75_vm0 = vcmask 1043456   ;;  %vm71_vm1 = vcmask 31744   ;;  %v61_v0 = vld [vmem:[%s1064_s1] sm:$0xf] }
   0xc   :  { %v70_v1 = vld [vmem:[%s1063_s0] sm:$0x3]  ;;  %738 = vmatpush.msk.msra.mxu0 %vm75_vm0, %v61_v0  ;;  %741 = vmatpush.msk.msra.mxu1 %vm75_vm0, %v61_v0  ;;  %v749_v2 = vld [vmem:[%s1063_s0 + $0x8] sm:$0x3]  ;;  %v65_v3 = vld [vmem:[%s1065_s2 + $0x18] sm:$0xff]  ;;  %vm275_vm2 = vcmask 261120  }
   0xd   :  { %739 = vmatmul.msk.f32.vlgmr.msra.gmra.mxu0 %vm71_vm1, %v70_v1  ;;  %744 = vmatpush.msk.msra.mxu2 %vm75_vm0, %v61_v0  ;;  %v64_v4 = vld [vmem:[%s1065_s2 + $0x10] sm:$0xff]  ;;  %v740_v5 = vld [vmem:[%s1063_s0 + $0x2] sm:$0x3]  ;;  %v63_v6 = vld [vmem:[%s1065_s2 + $0x8] sm:$0xff]  ;;  %vm664_vm3 = vcmask 1041408   ;;  %vm667_vm4 = vcmask 1045504  }
   0xe   :  { %753 = vmatpush.msk.msrb.mxu1 %vm75_vm0, %v61_v0  ;;  %750 = vmatpush.msk.msrb.mxu0 %vm75_vm0, %v61_v0  ;;  %v62_v7 = vld [vmem:[%s1065_s2] sm:$0xff]  ;;  %v752_v13 = vld [vmem:[%s1063_s0 + $0xa] sm:$0x3]  ;;  %v755_v20 = vld [vmem:[%s1063_s0 + $0xc] sm:$0x3]  ;;  %vm723_vm5 = vcmask 25600  }
   0xf   :  { %756 = vmatpush.msk.msrb.mxu2 %vm75_vm0, %v61_v0  ;;  %747 = vmatpush.msk.msra.mxu3 %vm75_vm0, %v61_v0  ;;  %v962_v8 = vld [vmem:[%s1066_s3] ss:$0 sm:$0xff]  ;;  %v743_v12 = vld [vmem:[%s1063_s0 + $0x4] sm:$0x3]  ;;  %v746_v21 = vld [vmem:[%s1063_s0 + $0x6] sm:$0x3] }
  0x10   :  { %291 = vmatpush.msra.mxu0 %v65_v3  ;;  %742 = vmatmul.msk.f32.vlgmr.msra.gmra.mxu1 %vm71_vm1, %v740_v5  ;;  %v758_v28 = vld [vmem:[%s1063_s0 + $0xe] sm:$0x3]  ;;  %v454_v48 = vld [vmem:[#allocation2 + $0x18] sm:$0xff]  ;;  %v453_v49 = vld [vmem:[#allocation2 + $0x10] sm:$0xff] }
  0x11   :  { %759 = vmatpush.msk.msrb.mxu3 %vm75_vm0, %v61_v0  ;;  %316 = vmatpush.msra.mxu1 %v65_v3  ;;  %v452_v50 = vld [vmem:[#allocation2 + $0x8] sm:$0xff]  ;;  %v451_v51 = vld [vmem:[#allocation2] sm:$0xff] }
  0x12   :  { %292 = vmatpush.msra.mxu0 %v64_v4  ;;  %745 = vmatmul.msk.f32.vlgmr.msra.gmra.mxu2 %vm71_vm1, %v743_v12  ;;  %v1003_v56 = vld [vmem:[%s1068_s5] ss:$0 sm:$0xff] }
  0x13   :  { %317 = vmatpush.msra.mxu1 %v64_v4  ;;  %341 = vmatpush.msra.mxu2 %v65_v3 }
  0x14   :  { %293 = vmatpush.msra.mxu0 %v63_v6  ;;  %748 = vmatmul.msk.f32.vlgmr.msra.gmra.mxu3 %vm71_vm1, %v746_v21 }
  0x15   :  { %751 = vmatmul.msk.f32.vlgmr.msrb.gmra.mxu0 %vm71_vm1, %v749_v2  ;;  %318 = vmatpush.msra.mxu1 %v63_v6 }
  0x16   :  { %294 = vmatpush.msra.mxu0 %v62_v7  ;;  %342 = vmatpush.msra.mxu2 %v64_v4 }
  0x17   :  { %319 = vmatpush.msra.mxu1 %v62_v7  ;;  %366 = vmatpush.msra.mxu3 %v65_v3 }
  0x18   :  { %391 = vmatpush.msrb.mxu0 %v65_v3  ;;  %754 = vmatmul.msk.f32.vlgmr.msrb.gmra.mxu1 %vm71_vm1, %v752_v13 }
  0x19   :  { %416 = vmatpush.msrb.mxu1 %v65_v3  ;;  %343 = vmatpush.msra.mxu2 %v63_v6 }
  0x1a   :  { %392 = vmatpush.msrb.mxu0 %v64_v4  ;;  %757 = vmatmul.msk.f32.vlgmr.msrb.gmra.mxu2 %vm71_vm1, %v755_v20 }
  0x1b   :  { %417 = vmatpush.msrb.mxu1 %v64_v4  ;;  %344 = vmatpush.msra.mxu2 %v62_v7 }
  0x1c   :  { %393 = vmatpush.msrb.mxu0 %v63_v6  ;;  %367 = vmatpush.msra.mxu3 %v64_v4 }
  0x1d   :  { %418 = vmatpush.msrb.mxu1 %v63_v6  ;;  %441 = vmatpush.msrb.mxu2 %v65_v3 }
  0x1e   :  { %394 = vmatpush.msrb.mxu0 %v62_v7  ;;  %368 = vmatpush.msra.mxu3 %v63_v6 }
  0x1f   :  { %419 = vmatpush.msrb.mxu1 %v62_v7  ;;  %442 = vmatpush.msrb.mxu2 %v64_v4 }
  0x20   :  { %369 = vmatpush.msra.mxu3 %v62_v7 }
  0x21   :  { %443 = vmatpush.msrb.mxu2 %v63_v6  ;;  %760 = vmatmul.msk.f32.vlgmr.msrb.gmra.mxu3 %vm71_vm1, %v758_v28  ;;  %v675_v6 = vld [vmem:[#allocation4 + $0x18] sm:$0xff] }
  0x22   :  { %474 = vmatpush.msrb.mxu3 %v454_v48 }
  0x23   :  { %444 = vmatpush.msrb.mxu2 %v62_v7  ;;  %v674_v7 = vld [vmem:[#allocation4 + $0x10] sm:$0xff] }
  0x24   :  { %475 = vmatpush.msrb.mxu3 %v453_v49 }
  0x26   :  { %476 = vmatpush.msrb.mxu3 %v452_v50 }
  0x28   :  { %477 = vmatpush.msrb.mxu3 %v451_v51 }
  0x8a   :  { %v96_v9 = vpop.f32.mrf.mxu0 }
  0x8b   :  { %v97_v10 = vadd.f32 %v962_v8, %v96_v9  ;;  %v672_v9 = vld [vmem:[#allocation4] sm:$0xff] }
  0x8d   :  { %785 = vtanh.f32 %v97_v10  ;;  %v121_v15 = vpop.f32.mrf.mxu1 }
  0x8e   :  { %v122_v16 = vadd.f32 %v962_v8, %v121_v15 }
  0x92   :  { %v196_v14 = vpop.f32.mrf.mxu0 }
  0x93   :  { %v786_v11 = vpop.eup %785  ;;  %v197_v36 = vadd.f32 %v962_v8, %v196_v14 }
  0x94   :  { %761 = vmatmul.msk.f32.vlgmr.msra.gmra.mxu0 %vm275_vm2, %v786_v11 }
  0x95   :  { %v221_v22 = vpop.f32.mrf.mxu1  ;;  %v146_v23 = vpop.f32.mrf.mxu2  ;;  %498 = vmatpush.msra.mxu0 %v454_v48 }
  0x96   :  { %v147_v24 = vadd.f32 %v962_v8, %v146_v23  ;;  %v222_v40 = vadd.f32 %v962_v8, %v221_v22 }
  0x97   :  { %v171_v30 = vpop.f32.mrf.mxu3  ;;  %499 = vmatpush.msra.mxu0 %v453_v49 }
  0x98   :  { %v172_v31 = vadd.f32 %v962_v8, %v171_v30 }
  0x99   :  { %500 = vmatpush.msra.mxu0 %v452_v50 }
  0x9b   :  { %501 = vmatpush.msra.mxu0 %v451_v51 }
  0x9d   :  { %v246_v29 = vpop.f32.mrf.mxu2 }
  0x9e   :  { %v247_v44 = vadd.f32 %v962_v8, %v246_v29 }
  0xa4   :  { %v271_v35 = vpop.f32.mrf.mxu3 }
  0xa5   :  { %v272_v52 = vadd.f32 %v962_v8, %v271_v35  ;;  %v673_v8 = vld [vmem:[#allocation4 + $0x8] sm:$0xff] }
 0x111   :  { %v296_v17 = vpop.f32.mrf.mxu0 }
 0x112   :  { %v299_v18 = vadd.f32 %v296_v17, %v122_v16  ;;  %v784_v17 = vld [vmem:[%s1070_s7] ss:$0 sm:$0xff] }
 0x114   :  { %787 = vtanh.f32 %v299_v18 }
 0x11a   :  { %v788_v19 = vpop.eup %787 }
 0x11b   :  { %762 = vmatmul.msk.f32.vlgmr.msra.gmra.mxu1 %vm275_vm2, %v788_v19 }
 0x11c   :  { %522 = vmatpush.msra.mxu1 %v454_v48 }
 0x11e   :  { %523 = vmatpush.msra.mxu1 %v453_v49 }
 0x120   :  { %524 = vmatpush.msra.mxu1 %v452_v50 }
 0x122   :  { %525 = vmatpush.msra.mxu1 %v451_v51 }
 0x198   :  { %v321_v25 = vpop.f32.mrf.mxu1 }
 0x199   :  { %v324_v26 = vadd.f32 %v321_v25, %v147_v24 }
 0x19b   :  { %789 = vtanh.f32 %v324_v26 }
 0x1a1   :  { %v790_v27 = vpop.eup %789 }
 0x1a2   :  { %763 = vmatmul.msk.f32.vlgmr.msra.gmra.mxu2 %vm275_vm2, %v790_v27 }
 0x1a3   :  { %546 = vmatpush.msra.mxu2 %v454_v48 }
 0x1a5   :  { %547 = vmatpush.msra.mxu2 %v453_v49 }
 0x1a7   :  { %548 = vmatpush.msra.mxu2 %v452_v50 }
 0x1a9   :  { %549 = vmatpush.msra.mxu2 %v451_v51 }
 0x225   :  { %v346_v32 = vpop.f32.mrf.mxu2 }
 0x226   :  { %v349_v33 = vadd.f32 %v346_v32, %v172_v31 }
 0x228   :  { %791 = vtanh.f32 %v349_v33 }
 0x22e   :  { %v792_v34 = vpop.eup %791 }
 0x22f   :  { %764 = vmatmul.msk.f32.vlgmr.msra.gmra.mxu3 %vm275_vm2, %v792_v34 }
 0x230   :  { %570 = vmatpush.msra.mxu3 %v454_v48 }
 0x232   :  { %571 = vmatpush.msra.mxu3 %v453_v49 }
 0x234   :  { %572 = vmatpush.msra.mxu3 %v452_v50 }
 0x236   :  { %573 = vmatpush.msra.mxu3 %v451_v51 }
 0x2b2   :  { %v371_v37 = vpop.f32.mrf.mxu3 }
 0x2b3   :  { %v374_v38 = vadd.f32 %v371_v37, %v197_v36 }
 0x2b5   :  { %793 = vtanh.f32 %v374_v38 }
 0x2bb   :  { %v794_v39 = vpop.eup %793 }
 0x2bc   :  { %765 = vmatmul.msk.f32.vlgmr.msrb.gmra.mxu0 %vm275_vm2, %v794_v39 }
 0x2bd   :  { %594 = vmatpush.msrb.mxu0 %v454_v48 }
 0x2bf   :  { %595 = vmatpush.msrb.mxu0 %v453_v49 }
 0x2c1   :  { %596 = vmatpush.msrb.mxu0 %v452_v50 }
 0x2c3   :  { %597 = vmatpush.msrb.mxu0 %v451_v51 }
 0x339   :  { %v396_v41 = vpop.f32.mrf.mxu0 }
 0x33a   :  { %v399_v42 = vadd.f32 %v396_v41, %v222_v40 }
 0x33c   :  { %795 = vtanh.f32 %v399_v42 }
 0x342   :  { %v796_v43 = vpop.eup %795 }
 0x343   :  { %766 = vmatmul.msk.f32.vlgmr.msrb.gmra.mxu1 %vm275_vm2, %v796_v43 }
 0x344   :  { %618 = vmatpush.msrb.mxu1 %v454_v48 }
 0x346   :  { %619 = vmatpush.msrb.mxu1 %v453_v49 }
 0x348   :  { %620 = vmatpush.msrb.mxu1 %v452_v50 }
 0x34a   :  { %621 = vmatpush.msrb.mxu1 %v451_v51 }
 0x3c0   :  { %v421_v45 = vpop.f32.mrf.mxu1 }
 0x3c1   :  { %v424_v46 = vadd.f32 %v421_v45, %v247_v44 }
 0x3c3   :  { %797 = vtanh.f32 %v424_v46 }
 0x3c9   :  { %v798_v47 = vpop.eup %797 }
 0x3ca   :  { %767 = vmatmul.msk.f32.vlgmr.msrb.gmra.mxu2 %vm275_vm2, %v798_v47 }
 0x3cb   :  { %642 = vmatpush.msrb.mxu2 %v454_v48 }
 0x3cd   :  { %643 = vmatpush.msrb.mxu2 %v453_v49 }
 0x3cf   :  { %644 = vmatpush.msrb.mxu2 %v452_v50 }
 0x3d1   :  { %645 = vmatpush.msrb.mxu2 %v451_v51 }
 0x44d   :  { %v446_v53 = vpop.f32.mrf.mxu2 }
 0x44e   :  { %v449_v54 = vadd.f32 %v446_v53, %v272_v52 }
 0x450   :  { %799 = vtanh.f32 %v449_v54 }
 0x456   :  { %v800_v55 = vpop.eup %799 }
 0x457   :  { %768 = vmatmul.msk.f32.vlgmr.msrb.gmra.mxu3 %vm275_vm2, %v800_v55 }
 0x458   :  { %698 = vmatpush.msrb.mxu3 %v675_v6 }
 0x45a   :  { %699 = vmatpush.msrb.mxu3 %v674_v7 }
 0x45c   :  { %700 = vmatpush.msrb.mxu3 %v673_v8 }
 0x45e   :  { %701 = vmatpush.msrb.mxu3 %v672_v9 }
 0x4da   :  { %v479_v57 = vpop.f32.mrf.mxu3 }
 0x4db   :  { %v480_v58 = vadd.f32 %v1003_v56, %v479_v57 }
 0x4dd   :  { %801 = vtanh.f32 %v480_v58 }
 0x4e3   :  { %v802_v59 = vpop.eup %801 }
 0x4e4   :  { %769 = vmatmul.msk.f32.vlgmr.msra.gmra.mxu0 %vm275_vm2, %v802_v59 }
 0x561   :  { %v503_v60 = vpop.f32.mrf.mxu0 }
 0x562   :  { %v504_v61 = vadd.f32 %v1003_v56, %v503_v60 }
 0x564   :  { %803 = vtanh.f32 %v504_v61 }
 0x56a   :  { %v804_v62 = vpop.eup %803 }
 0x56b   :  { %770 = vmatmul.msk.f32.vlgmr.msra.gmra.mxu1 %vm275_vm2, %v804_v62  ;;  %v651_v1 = vrot.slane %v804_v62, 6 }
 0x56d   :  { %v665_v4 = vsel %vm664_vm3, %v802_v59, %v651_v1 }
 0x5e8   :  { %v527_v63 = vpop.f32.mrf.mxu1 }
 0x5e9   :  { %v528_v0 = vadd.f32 %v1003_v56, %v527_v63 }
 0x5eb   :  { %805 = vtanh.f32 %v528_v0 }
 0x5f1   :  { %v806_v2 = vpop.eup %805 }
 0x5f2   :  { %v653_v3 = vrot.slane %v806_v2, 4  ;;  %771 = vmatmul.msk.f32.vlgmr.msra.gmra.mxu2 %vm275_vm2, %v806_v2 }
 0x5f4   :  { %v666_v5 = vsel %vm75_vm0, %v665_v4, %v653_v3 }
 0x675   :  { %v551_v10 = vpop.f32.mrf.mxu2 }
 0x676   :  { %v552_v11 = vadd.f32 %v1003_v56, %v551_v10 }
 0x678   :  { %807 = vtanh.f32 %v552_v11 }
 0x67e   :  { %v808_v12 = vpop.eup %807 }
 0x67f   :  { %772 = vmatmul.msk.f32.vlgmr.msra.gmra.mxu3 %vm275_vm2, %v808_v12  ;;  %v655_v13 = vrot.slane %v808_v12, 2 }
 0x681   :  { %v668_v14 = vsel %vm667_vm4, %v666_v5, %v655_v13 }
 0x687   :  { %776 = vmatmul.msk.f32.vlgmr.msrb.gmra.mxu3 %vm275_vm2, %v668_v14 }
 0x702   :  { %v575_v15 = vpop.f32.mrf.mxu3 }
 0x703   :  { %v576_v16 = vadd.f32 %v1003_v56, %v575_v15 }
 0x705   :  { %809 = vtanh.f32 %v576_v16 }
 0x70a   :  { %v703_v18 = vpop.f32.mrf.mxu3 }
 0x70b   :  { %v810_v19 = vpop.eup %809  ;;  %v704_v20 = vadd.f32 %v784_v17, %v703_v18 }
 0x70c   :  { %773 = vmatmul.msk.f32.vlgmr.msrb.gmra.mxu0 %vm275_vm2, %v810_v19 }
 0x70d   :  { %v711_v21 = vrot.slane %v704_v20, 2  ;;  %v712_v22 = vrot.slane %v704_v20, 4  ;;  %v713_v23 = vrot.slane %v704_v20, 6  ;;  %724 = vst.msk [vmem:[%s1071_s8] sm:$0x3] %vm723_vm5, %v704_v20 }
 0x70f   :  { %725 = vst.msk [vmem:[%s1071_s8 + $0x2] sm:$0x3] %vm723_vm5, %v711_v21 }
 0x710   :  { %726 = vst.msk [vmem:[%s1071_s8 + $0x4] sm:$0x3] %vm723_vm5, %v712_v22 }
 0x711   :  { %727 = vst.msk [vmem:[%s1071_s8 + $0x6] sm:$0x3] %vm723_vm5, %v713_v23 }
 0x789   :  { %v599_v24 = vpop.f32.mrf.mxu0 }
 0x78a   :  { %v600_v25 = vadd.f32 %v1003_v56, %v599_v24 }
 0x78c   :  { %811 = vtanh.f32 %v600_v25 }
 0x792   :  { %v812_v26 = vpop.eup %811 }
 0x793   :  { %774 = vmatmul.msk.f32.vlgmr.msrb.gmra.mxu1 %vm275_vm2, %v812_v26  ;;  %v657_v29 = vrot.slane %v812_v26, 6 }
 0x795   :  { %v669_v32 = vsel %vm664_vm3, %v810_v19, %v657_v29 }
 0x810   :  { %v623_v27 = vpop.f32.mrf.mxu1 }
 0x811   :  { %v624_v28 = vadd.f32 %v1003_v56, %v623_v27 }
 0x813   :  { %813 = vtanh.f32 %v624_v28 }
 0x819   :  { %v814_v30 = vpop.eup %813 }
 0x81a   :  { %v659_v31 = vrot.slane %v814_v30, 4  ;;  %775 = vmatmul.msk.f32.vlgmr.msrb.gmra.mxu2 %vm275_vm2, %v814_v30 }
 0x81c   :  { %v670_v33 = vsel %vm75_vm0, %v669_v32, %v659_v31 }
 0x89d   :  { %v647_v34 = vpop.f32.mrf.mxu2 }
 0x89e   :  { %v648_v35 = vadd.f32 %v1003_v56, %v647_v34 }
 0x8a0   :  { %815 = vtanh.f32 %v648_v35 }
 0x8a6   :  { %v816_v36 = vpop.eup %815 }
 0x8a7   :  { %v662_v37 = vrot.slane %v816_v36, 2 }
 0x8a9   :  { %v671_v38 = vsel %vm667_vm4, %v670_v33, %v662_v37 }
 0x8aa   :  { %777 = vmatmul.msk.f32.gmra.mxu3 %vm275_vm2, %v671_v38 }
 0x92d   :  { %v706_v39 = vpop.f32.mrf.mxu3 }
 0x92e   :  { %v707_v40 = vadd.f32 %v784_v17, %v706_v39 }
 0x930   :  { %v714_v41 = vrot.slane %v707_v40, 2  ;;  %v715_v42 = vrot.slane %v707_v40, 4  ;;  %v716_v43 = vrot.slane %v707_v40, 6  ;;  %728 = vst.msk [vmem:[%s1071_s8 + $0x8] sm:$0x3] %vm723_vm5, %v707_v40 }
 0x932   :  { %729 = vst.msk [vmem:[%s1071_s8 + $0xa] sm:$0x3] %vm723_vm5, %v714_v41 }
 0x933   :  { %730 = vst.msk [vmem:[%s1071_s8 + $0xc] sm:$0x3] %vm723_vm5, %v715_v42 }
 0x934   :  { %731 = vst.msk [vmem:[%s1071_s8 + $0xe] sm:$0x3] %vm723_vm5, %v716_v43 }
 0x935   :  { %736 = vsyncpa [#allocation3], 1 }
 0x936   :  { %737 = vsyncpa [#allocation5], 1 }

</bundles_post_ra>
